<compile_context>
chip_gen: v7x
topology: tpu7x:2x2x1
jax: 0.10.0
libtpu: 0.0.40
codegen_flags: <defaults>
</compile_context>

<pallas_src>
import functools

import numpy as np

import jax
import jax.numpy as jnp
from jax.experimental import pallas as pl
from jax.experimental.pallas import tpu as pltpu


# ----------------------------- packed-vector row indices -----------------------------

(ROW_BG01, ROW_BG02, ROW_GAMMA0, ROW_BETA0,
 ROW_BG11, ROW_BG12, ROW_GAMMA1, ROW_BETA1,
 ROW_BFC0, ROW_BFC1, ROW_BFC2) = range(11)

_WEIGHT_ORDER = ("wg01", "wg02", "wg11", "wg12", "w0", "w1", "w2", "vecs")


# ----------------------------- fused Pallas kernel -----------------------------

def _synthnet_kernel(x_ref, adj_ref, maskm_ref, negm_ref, syn_ref,
                     wg01_ref, wg02_ref, wg11_ref, wg12_ref,
                     w0_ref, w1_ref, w2_ref, vec_ref,
                     o_ref):
    f32 = jnp.float32
    adj = adj_ref[...]                               # (N, N); identity pre-folded (eps = 0)

    def vrow(i):                                     # one packed (1, D) bias / scale row
        return vec_ref[i:i + 1, :]

    def gin_bn(h, w_a_ref, b_a, w_b_ref, b_b, g, bt, relu):
        # GIN aggregation (eps = 0): adj already contains +I, so a single MXU matmul.
        agg = jnp.dot(adj, h, preferred_element_type=f32)
        z = jnp.dot(agg.astype(w_a_ref.dtype), w_a_ref[...],
                    preferred_element_type=f32) + vrow(b_a)
        z = jnp.maximum(z, 0.0)
        y = jnp.dot(z.astype(w_b_ref.dtype), w_b_ref[...],
                    preferred_element_type=f32) + vrow(b_b)
        # BatchNorm1d over the node (batch) dim, training-mode statistics, eps = 1e-5.
        mean = jnp.mean(y, axis=0, keepdims=True)
        var = jnp.mean(jnp.square(y - mean), axis=0, keepdims=True)
        scale = vrow(g) * jax.lax.rsqrt(var + 1e-5)  # fused gamma * rsqrt (EUP)
        y = (y - mean) * scale + vrow(bt)
        return jnp.maximum(y, 0.0) if relu else y

    h0 = gin_bn(x_ref[...], wg01_ref, ROW_BG01, wg02_ref, ROW_BG02,
                ROW_GAMMA0, ROW_BETA0, relu=True)            # GIN layer 0 (+ReLU)
    h1 = gin_bn(h0, wg11_ref, ROW_BG11, wg12_ref, ROW_BG12,
                ROW_GAMMA1, ROW_BETA1, relu=False)           # GIN layer 1 (no ReLU)

    # Pooling: mean via pre-normalised membership matmul, max via additive -inf mask.
    mean_pool = jnp.dot(maskm_ref[...], h1, preferred_element_type=f32)        # (G, D)
    max_pool = jnp.max(h1[None, :, :] + negm_ref[...][:, :, None], axis=1)     # (G, D)

    # Fused FC head: one K = 3*D matmul over [mean | max | folded-synth] features.
    feat = jnp.concatenate([mean_pool, max_pool, syn_ref[...]], axis=1)        # (G, 3*D)
    x = jnp.dot(feat.astype(w0_ref.dtype), w0_ref[...],
                preferred_element_type=f32) + vrow(ROW_BFC0)
    x = jnp.maximum(x, 0.0)
    x = jnp.dot(x.astype(w1_ref.dtype), w1_ref[...],
                preferred_element_type=f32) + vrow(ROW_BFC1)
    x = jnp.maximum(x, 0.0)
    o_ref[...] = (jnp.dot(x.astype(w2_ref.dtype), w2_ref[...],
                          preferred_element_type=f32) + vrow(ROW_BFC2)).astype(o_ref.dtype)


def _const_index(ndim):
    return lambda b: (0,) * ndim


def _fused_synthnet(x_aug, adj_aug, mask_norm, neg_mask, syn_pad, folded):
    n_batches = x_aug.shape[0]
    n_graphs = mask_norm.shape[1]
    d_pad = folded["vecs"].shape[1]

    data_args = (x_aug, adj_aug, mask_norm, neg_mask, syn_pad)
    # Per-batch blocks: leading batch dim squeezed, advance with the grid (double-buffered).
    data_specs = [pl.BlockSpec((None,) + a.shape[1:], lambda b: (b, 0, 0)) for a in data_args]
    # Weight blocks: constant index_map -> DMA'd once, VMEM-resident across all grid steps.
    w_args = tuple(folded[k] for k in _WEIGHT_ORDER)
    w_specs = [pl.BlockSpec(w.shape, _const_index(w.ndim)) for w in w_args]

    # TODO(synk): for large graphs the dense adjacency (N^2 f32) must be tiled over node
    # blocks (or replaced with gather-based sparse aggregation) before it exceeds VMEM,
    # which happens first on v7x (64 MiB).
    return pl.pallas_call(
        _synthnet_kernel,
        out_shape=jax.ShapeDtypeStruct((n_batches, n_graphs, d_pad), jnp.float32),
        grid=(n_batches,),
        in_specs=data_specs + w_specs,
        out_specs=pl.BlockSpec((None, n_graphs, d_pad), lambda b: (b, 0, 0)),
        compiler_params=pltpu.CompilerParams(
            dimension_semantics=("parallel",),          # shards batches across v7x's 2 TCs
            vmem_limit_bytes=32 * 1024 * 1024),
    )(*data_args, *w_args)


@functools.partial(jax.jit, static_argnames=("n_classes",))
def synthnet_forward(folded, x_aug, adj_aug, mask_norm, neg_mask, syn_pad, *, n_classes):
    out = _fused_synthnet(x_aug, adj_aug, mask_norm, neg_mask, syn_pad, folded)
    return out[:, :, :n_classes]                       # strip the lane padding


# ----------------------------- wrapper-side preprocessing (per graph-batch) --------------

def prepare_inputs(node_type, num_inv_pred, edge_index, batch, syn_vec, *, n_graphs, feat_pad):
    n_nodes = node_type.shape[0]
    # Node features + a ones column (carries the folded node-encoder bias through aggregation).
    x_aug = jnp.concatenate([node_type.reshape(-1, 1).astype(jnp.float32),
                             num_inv_pred.reshape(-1, 1).astype(jnp.float32),
                             jnp.ones((n_nodes, 1), jnp.float32)], axis=1)
    # Dense adjacency: adj[dst, src] += 1 (multi-edges accumulate) with the GIN identity
    # ((1 + eps) * h, eps = 0) folded in.
    src, dst = edge_index[0], edge_index[1]
    adj = jnp.zeros((n_nodes, n_nodes), jnp.float32).at[dst, src].add(1.0)
    adj_aug = adj + jnp.eye(n_nodes, dtype=jnp.float32)
    # Graph-membership mask, pre-normalised for mean pooling; additive mask for max pooling.
    member = batch[None, :] == jnp.arange(n_graphs, dtype=batch.dtype)[:, None]
    mask = member.astype(jnp.float32)
    counts = jnp.sum(mask, axis=1, keepdims=True)
    # TODO(synk): an empty graph (zero nodes for a batch id) yields a NaN mean-pool row and a
    # -1e30 max-pool row, matching the torch scatter-pooling edge case.
    mask_norm = mask / counts
    neg_mask = jnp.where(member, 0.0, -1e30).astype(jnp.float32)
    # Synth vector, zero-padded to feat_pad lanes so the FC-head concat is lane-aligned.
    syn = syn_vec.reshape(-1, 20).astype(jnp.float32)
    syn_pad = jnp.pad(syn, ((0, 0), (0, feat_pad - 20)))
    return x_aug, adj_aug, mask_norm, neg_mask, syn_pad


# ----------------------------- parameter setup (runs once) -----------------------------

def conv1d_as_matmul(w, b, f_in, stride):
    """Lower Conv1d(1, 1, ksize, stride) to a dense [f_in, L] matmul + bias (setup-time only)."""
    w = np.asarray(w, np.float32)
    ksize = w.shape[0]
    L = (f_in - ksize) // stride + 1
    wmat = np.zeros((f_in, L), np.float32)
    for t in range(L):
        wmat[t * stride:t * stride + ksize, t] = w
    return jnp.asarray(wmat), jnp.full((L,), float(b), jnp.float32)


def init_params(key, node_in_dim, synth_in_dim, emb_dim, hidden_dim, n_classes):
    keys = jax.random.split(key, 16)

    def lin(k, fan_in, fan_out):
        kw, kb = jax.random.split(k)
        w = jax.random.normal(kw, (fan_in, fan_out), jnp.float32) / jnp.sqrt(float(fan_in))
        b = jax.random.normal(kb, (fan_out,), jnp.float32) * 0.01
        return w, b

    p = {
        "node_enc": lin(keys[0], 2, node_in_dim + 1),
        "synth_enc": lin(keys[1], 20, synth_in_dim),
        "gin0_l1": lin(keys[2], node_in_dim + 1, emb_dim),
        "gin0_l2": lin(keys[3], emb_dim, emb_dim),
        "gin0_bn": (jnp.ones((emb_dim,), jnp.float32), jnp.zeros((emb_dim,), jnp.float32)),
        "gin1_l1": lin(keys[4], emb_dim, emb_dim),
        "gin1_l2": lin(keys[5], emb_dim, emb_dim),
        "gin1_bn": (jnp.ones((emb_dim,), jnp.float32), jnp.zeros((emb_dim,), jnp.float32)),
        "conv1": (jax.random.normal(keys[6], (6,), jnp.float32) * 0.2,
                  jax.random.normal(keys[7], (), jnp.float32) * 0.01),
        "conv2": (jax.random.normal(keys[8], (9,), jnp.float32) * 0.2,
                  jax.random.normal(keys[9], (), jnp.float32) * 0.01),
        "conv3": (jax.random.normal(keys[10], (12,), jnp.float32) * 0.2,
                  jax.random.normal(keys[11], (), jnp.float32) * 0.01),
    }
    l1 = (synth_in_dim - 6) // 3 + 1
    l2 = (synth_in_dim - 9) // 3 + 1
    l3 = (synth_in_dim - 12) // 3 + 1
    in_fc = 2 * emb_dim + l1 + l2 + l3            # == gnn_embed_dim + conv flatten dims
    p["fc0"] = lin(keys[12], in_fc, hidden_dim)
    p["fc1"] = lin(keys[13], hidden_dim, hidden_dim)
    p["fc2"] = lin(keys[14], hidden_dim, n_classes)
    return p


def fold_params(p, synth_in_dim, emb_dim, hidden_dim, n_classes):
    """Pre-fold every purely-linear chain (exact modulo f32 associativity) and pack:
       * node_encoder into GIN-0's first Linear (bias carried via a ones feature column),
       * synth_encoder -> conv1/2/3 -> fc0[conv rows] into one (D, hidden) block,
       * fc0's mean / max / synth row blocks concatenated into one lane-aligned matrix,
       * fc2 / output padded to D lanes,
       * all (1, D) biases / BN params packed into a single (11, D) array.
       Large matrices are stored in bfloat16 (accumulation stays f32 in the kernel)."""
    assert emb_dim == hidden_dim, "packed bias rows assume emb_dim == hidden_dim"
    D = emb_dim
    assert n_classes <= D and 20 <= D

    We, be = p["node_enc"]                                         # (2, D_in+1), (D_in+1,)
    Wg01, bg01 = p["gin0_l1"]                                      # (D_in+1, emb), (emb,)
    wg01_fold = jnp.concatenate([We, be[None, :]], axis=0) @ Wg01  # (3, emb)

    Wse, bse = p["synth_enc"]                                      # (20, S), (S,)
    wmats, biases = [], []
    for name in ("conv1", "conv2", "conv3"):
        wm, bb = conv1d_as_matmul(*p[name], synth_in_dim, stride=3)
        wmats.append(wm)
        biases.append(bb)
    Wc = jnp.concatenate(wmats, axis=1)                            # (S, L1+L2+L3)
    bc = jnp.concatenate(biases)                                   # (L1+L2+L3,)

    W0, b0 = p["fc0"]                                              # (2*emb + 54, hidden)
    W0_mean = W0[:emb_dim]
    W0_max = W0[emb_dim:2 * emb_dim]
    W0_conv = W0[2 * emb_dim:]
    w_syn = Wse @ (Wc @ W0_conv)                                   # (20, hidden)
    b0_eff = b0 + (bse @ Wc + bc) @ W0_conv                        # (hidden,)
    w_syn_pad = jnp.zeros((D, hidden_dim), jnp.float32).at[:20].set(w_syn)
    w0_all = jnp.concatenate([W0_mean, W0_max, w_syn_pad], axis=0)  # (3*D, hidden)

    W2, b2 = p["fc2"]
    w2_pad = jnp.zeros((hidden_dim, D), jnp.float32).at[:, :n_classes].set(W2)
    b2_pad = jnp.zeros((D,), jnp.float32).at[:n_classes].set(b2)

    vecs = jnp.stack([bg01, p["gin0_l2"][1], p["gin0_bn"][0], p["gin0_bn"][1],
                      p["gin1_l1"][1], p["gin1_l2"][1], p["gin1_bn"][0], p["gin1_bn"][1],
                      b0_eff, p["fc1"][1], b2_pad], axis=0).astype(jnp.float32)  # (11, D)

    bf = lambda w: w.astype(jnp.bfloat16)
    return {
        "wg01": wg01_fold,                 # tiny (3, D): keep f32
        "wg02": bf(p["gin0_l2"][0]),
        "wg11": bf(p["gin1_l1"][0]),
        "wg12": bf(p["gin1_l2"][0]),
        "w0": bf(w0_all),
        "w1": bf(p["fc1"][0]),
        "w2": bf(w2_pad),
        "vecs": vecs,
    }


# ----------------------------- main -----------------------------

if __name__ == "__main__":
    key = jax.random.PRNGKey(0)
    kp, kdata = jax.random.split(key)

    B_BATCHES = 4               # independent graph-batches fused into one pallas_call
    N_NODES, N_GRAPHS, N_EDGES = 16, 2, 32
    NODE_INPUT_DIM = 7          # node_encoder output dim = NODE_INPUT_DIM + 1 = 8
    SYNTH_INPUT_DIM = 60        # synth_encoder output dim; conv flatten dims = 19/18/17
    EMB_DIM, HIDDEN_DIM, N_CLASSES = 128, 128, 4

    params = init_params(kp, NODE_INPUT_DIM, SYNTH_INPUT_DIM, EMB_DIM, HIDDEN_DIM, N_CLASSES)
    folded = fold_params(params, SYNTH_INPUT_DIM, EMB_DIM, HIDDEN_DIM, N_CLASSES)

    per_batch = []
    for bkey in jax.random.split(kdata, B_BATCHES):
        k1, k2, k3, k4, k5 = jax.random.split(bkey, 5)
        node_type = jax.random.randint(k1, (N_NODES,), 0, 3).astype(jnp.float32)
        num_inv_pred = jax.random.randint(k2, (N_NODES,), 0, 2).astype(jnp.float32)
        # Edges stay within each graph (nodes 0..7 -> graph 0, 8..15 -> graph 1).
        half = N_NODES // 2
        src0 = jax.random.randint(k3, (N_EDGES // 2,), 0, half)
        dst0 = jax.random.randint(k4, (N_EDGES // 2,), 0, half)
        edge_index = jnp.stack([jnp.concatenate([src0, src0 + half]),
                                jnp.concatenate([dst0, dst0 + half])])
        batch = jnp.concatenate([jnp.zeros(half, jnp.int32), jnp.ones(half, jnp.int32)])
        syn_vec = jax.random.uniform(k5, (N_GRAPHS, 20), jnp.float32)
        per_batch.append(prepare_inputs(node_type, num_inv_pred, edge_index, batch, syn_vec,
                                        n_graphs=N_GRAPHS, feat_pad=EMB_DIM))

    # Stack B graph-batches: x_aug (B,N,3), adj (B,N,N), mask (B,G,N), neg (B,G,N), syn (B,G,D).
    stacked = [jnp.stack(parts) for parts in zip(*per_batch)]

    out = synthnet_forward(folded, *stacked, n_classes=N_CLASSES)
    jax.block_until_ready(out)
    assert out.shape == (B_BATCHES, N_GRAPHS, N_CLASSES)
    assert bool(jnp.all(jnp.isfinite(out)))
    print("KERNEL_OK")
</pallas_src>

<mosaic_0001>
module attributes {stable_mosaic.version = 11 : i64} {
  func.func @_synthnet_kernel(%arg0: i32, %arg1: memref<1x16x3xf32, #tpu.memory_space<vmem>>, %arg2: memref<1x16x16xf32, #tpu.memory_space<vmem>>, %arg3: memref<1x2x16xf32, #tpu.memory_space<vmem>>, %arg4: memref<1x2x16xf32, #tpu.memory_space<vmem>>, %arg5: memref<1x2x128xf32, #tpu.memory_space<vmem>>, %arg6: memref<3x128xf32, #tpu.memory_space<vmem>>, %arg7: memref<128x128xbf16, #tpu.memory_space<vmem>>, %arg8: memref<128x128xbf16, #tpu.memory_space<vmem>>, %arg9: memref<128x128xbf16, #tpu.memory_space<vmem>>, %arg10: memref<384x128xbf16, #tpu.memory_space<vmem>>, %arg11: memref<128x128xbf16, #tpu.memory_space<vmem>>, %arg12: memref<128x128xbf16, #tpu.memory_space<vmem>>, %arg13: memref<11x128xf32, #tpu.memory_space<vmem>>, %arg14: memref<1x2x128xf32, #tpu.memory_space<vmem>>) attributes {dimension_semantics = [#tpu.dimension_semantics<parallel>], iteration_bounds = array<i64: 4>, scalar_prefetch = 0 : i64, scratch_operands = 0 : i64, tpu.core_type = #tpu.core_type<tc>, window_params = [{transform_indices = @transform_0, window_bounds = array<i64: 1, 16, 3>}, {transform_indices = @transform_1, window_bounds = array<i64: 1, 16, 16>}, {transform_indices = @transform_2, window_bounds = array<i64: 1, 2, 16>}, {transform_indices = @transform_3, window_bounds = array<i64: 1, 2, 16>}, {transform_indices = @transform_4, window_bounds = array<i64: 1, 2, 128>}, {pipeline_mode = #tpu.pipeline_mode<synchronous>, transform_indices = @transform_5, window_bounds = array<i64: 3, 128>}, {pipeline_mode = #tpu.pipeline_mode<synchronous>, transform_indices = @transform_6, window_bounds = array<i64: 128, 128>}, {pipeline_mode = #tpu.pipeline_mode<synchronous>, transform_indices = @transform_7, window_bounds = array<i64: 128, 128>}, {pipeline_mode = #tpu.pipeline_mode<synchronous>, transform_indices = @transform_8, window_bounds = array<i64: 128, 128>}, {pipeline_mode = #tpu.pipeline_mode<synchronous>, transform_indices = @transform_9, window_bounds = array<i64: 384, 128>}, {pipeline_mode = #tpu.pipeline_mode<synchronous>, transform_indices = @transform_10, window_bounds = array<i64: 128, 128>}, {pipeline_mode = #tpu.pipeline_mode<synchronous>, transform_indices = @transform_11, window_bounds = array<i64: 128, 128>}, {pipeline_mode = #tpu.pipeline_mode<synchronous>, transform_indices = @transform_12, window_bounds = array<i64: 11, 128>}, {transform_indices = @transform_13, window_bounds = array<i64: 1, 2, 128>}]} {
    %c0 = arith.constant 0 : index
    %c0_0 = arith.constant 0 : index
    %c0_1 = arith.constant 0 : index
    %0 = vector.load %arg2[%c0, %c0_0, %c0_1] : memref<1x16x16xf32, #tpu.memory_space<vmem>>, vector<1x16x16xf32>
    %1 = vector.shape_cast %0 : vector<1x16x16xf32> to vector<16x16xf32>
    %c0_2 = arith.constant 0 : index
    %c0_3 = arith.constant 0 : index
    %c0_4 = arith.constant 0 : index
    %2 = vector.load %arg1[%c0_2, %c0_3, %c0_4] : memref<1x16x3xf32, #tpu.memory_space<vmem>>, vector<1x16x3xf32>
    %3 = vector.shape_cast %2 : vector<1x16x3xf32> to vector<16x3xf32>
    %cst = arith.constant dense<0.000000e+00> : vector<16x3xf32>
    %4 = tpu.matmul %1, %3, %cst {dimension_numbers = #tpu.dot_dimension_numbers<[1], [0], [0], [1], [0, 0, 1, 1], [], []>} : vector<16x16xf32>, vector<16x3xf32>, vector<16x3xf32> -> vector<16x3xf32>
    %c0_5 = arith.constant 0 : index
    %c0_6 = arith.constant 0 : index
    %5 = vector.load %arg6[%c0_5, %c0_6] : memref<3x128xf32, #tpu.memory_space<vmem>>, vector<3x128xf32>
    %cst_7 = arith.constant dense<0.000000e+00> : vector<16x128xf32>
    %6 = tpu.matmul %4, %5, %cst_7 {dimension_numbers = #tpu.dot_dimension_numbers<[1], [0], [0], [1], [0, 0, 1, 1], [], []>} : vector<16x3xf32>, vector<3x128xf32>, vector<16x128xf32> -> vector<16x128xf32>
    %c0_8 = arith.constant 0 : index
    %c0_9 = arith.constant 0 : index
    %7 = vector.load %arg13[%c0_8, %c0_9] : memref<11x128xf32, #tpu.memory_space<vmem>>, vector<1x128xf32>
    %8 = vector.broadcast %7 : vector<1x128xf32> to vector<16x128xf32>
    %9 = arith.addf %6, %8 : vector<16x128xf32>
    %cst_10 = arith.constant 0.000000e+00 : f32
    %10 = vector.broadcast %cst_10 : f32 to vector<16x128xf32>
    %11 = arith.maximumf %9, %10 : vector<16x128xf32>
    %12 = arith.truncf %11 : vector<16x128xf32> to vector<16x128xbf16>
    %c0_11 = arith.constant 0 : index
    %c0_12 = arith.constant 0 : index
    %13 = vector.load %arg7[%c0_11, %c0_12] : memref<128x128xbf16, #tpu.memory_space<vmem>>, vector<128x128xbf16>
    %cst_13 = arith.constant dense<0.000000e+00> : vector<16x128xf32>
    %14 = tpu.matmul %12, %13, %cst_13 {dimension_numbers = #tpu.dot_dimension_numbers<[1], [0], [0], [1], [0, 0, 1, 1], [], []>} : vector<16x128xbf16>, vector<128x128xbf16>, vector<16x128xf32> -> vector<16x128xf32>
    %c1 = arith.constant 1 : index
    %c0_14 = arith.constant 0 : index
    %15 = vector.load %arg13[%c1, %c0_14] : memref<11x128xf32, #tpu.memory_space<vmem>>, vector<1x128xf32>
    %16 = vector.broadcast %15 : vector<1x128xf32> to vector<16x128xf32>
    %17 = arith.addf %14, %16 : vector<16x128xf32>
    %cst_15 = arith.constant dense<0.000000e+00> : vector<128xf32>
    %18 = vector.multi_reduction <add>, %17, %cst_15 [0] : vector<16x128xf32> to vector<128xf32>
    %19 = vector.shape_cast %18 : vector<128xf32> to vector<1x128xf32>
    %cst_16 = arith.constant 1.600000e+01 : f32
    %20 = vector.broadcast %cst_16 : f32 to vector<1x128xf32>
    %21 = arith.divf %19, %20 : vector<1x128xf32>
    %22 = vector.broadcast %21 : vector<1x128xf32> to vector<16x128xf32>
    %23 = arith.subf %17, %22 : vector<16x128xf32>
    %24 = arith.mulf %23, %23 : vector<16x128xf32>
    %cst_17 = arith.constant dense<0.000000e+00> : vector<128xf32>
    %25 = vector.multi_reduction <add>, %24, %cst_17 [0] : vector<16x128xf32> to vector<128xf32>
    %26 = vector.shape_cast %25 : vector<128xf32> to vector<1x128xf32>
    %cst_18 = arith.constant 1.600000e+01 : f32
    %27 = vector.broadcast %cst_18 : f32 to vector<1x128xf32>
    %28 = arith.divf %26, %27 : vector<1x128xf32>
    %c2 = arith.constant 2 : index
    %c0_19 = arith.constant 0 : index
    %29 = vector.load %arg13[%c2, %c0_19] : memref<11x128xf32, #tpu.memory_space<vmem>>, vector<1x128xf32>
    %cst_20 = arith.constant 9.99999974E-6 : f32
    %30 = vector.broadcast %cst_20 : f32 to vector<1x128xf32>
    %31 = arith.addf %28, %30 : vector<1x128xf32>
    %32 = math.rsqrt %31 : vector<1x128xf32>
    %33 = arith.mulf %29, %32 : vector<1x128xf32>
    %34 = vector.broadcast %21 : vector<1x128xf32> to vector<16x128xf32>
    %35 = arith.subf %17, %34 : vector<16x128xf32>
    %36 = vector.broadcast %33 : vector<1x128xf32> to vector<16x128xf32>
    %37 = arith.mulf %35, %36 : vector<16x128xf32>
    %c3 = arith.constant 3 : index
    %c0_21 = arith.constant 0 : index
    %38 = vector.load %arg13[%c3, %c0_21] : memref<11x128xf32, #tpu.memory_space<vmem>>, vector<1x128xf32>
    %39 = vector.broadcast %38 : vector<1x128xf32> to vector<16x128xf32>
    %40 = arith.addf %37, %39 : vector<16x128xf32>
    %cst_22 = arith.constant 0.000000e+00 : f32
    %41 = vector.broadcast %cst_22 : f32 to vector<16x128xf32>
    %42 = arith.maximumf %40, %41 : vector<16x128xf32>
    %cst_23 = arith.constant dense<0.000000e+00> : vector<16x128xf32>
    %43 = tpu.matmul %1, %42, %cst_23 {dimension_numbers = #tpu.dot_dimension_numbers<[1], [0], [0], [1], [0, 0, 1, 1], [], []>} : vector<16x16xf32>, vector<16x128xf32>, vector<16x128xf32> -> vector<16x128xf32>
    %44 = arith.truncf %43 : vector<16x128xf32> to vector<16x128xbf16>
    %c0_24 = arith.constant 0 : index
    %c0_25 = arith.constant 0 : index
    %45 = vector.load %arg8[%c0_24, %c0_25] : memref<128x128xbf16, #tpu.memory_space<vmem>>, vector<128x128xbf16>
    %cst_26 = arith.constant dense<0.000000e+00> : vector<16x128xf32>
    %46 = tpu.matmul %44, %45, %cst_26 {dimension_numbers = #tpu.dot_dimension_numbers<[1], [0], [0], [1], [0, 0, 1, 1], [], []>} : vector<16x128xbf16>, vector<128x128xbf16>, vector<16x128xf32> -> vector<16x128xf32>
    %c4 = arith.constant 4 : index
    %c0_27 = arith.constant 0 : index
    %47 = vector.load %arg13[%c4, %c0_27] : memref<11x128xf32, #tpu.memory_space<vmem>>, vector<1x128xf32>
    %48 = vector.broadcast %47 : vector<1x128xf32> to vector<16x128xf32>
    %49 = arith.addf %46, %48 : vector<16x128xf32>
    %cst_28 = arith.constant 0.000000e+00 : f32
    %50 = vector.broadcast %cst_28 : f32 to vector<16x128xf32>
    %51 = arith.maximumf %49, %50 : vector<16x128xf32>
    %52 = arith.truncf %51 : vector<16x128xf32> to vector<16x128xbf16>
    %c0_29 = arith.constant 0 : index
    %c0_30 = arith.constant 0 : index
    %53 = vector.load %arg9[%c0_29, %c0_30] : memref<128x128xbf16, #tpu.memory_space<vmem>>, vector<128x128xbf16>
    %cst_31 = arith.constant dense<0.000000e+00> : vector<16x128xf32>
    %54 = tpu.matmul %52, %53, %cst_31 {dimension_numbers = #tpu.dot_dimension_numbers<[1], [0], [0], [1], [0, 0, 1, 1], [], []>} : vector<16x128xbf16>, vector<128x128xbf16>, vector<16x128xf32> -> vector<16x128xf32>
    %c5 = arith.constant 5 : index
    %c0_32 = arith.constant 0 : index
    %55 = vector.load %arg13[%c5, %c0_32] : memref<11x128xf32, #tpu.memory_space<vmem>>, vector<1x128xf32>
    %56 = vector.broadcast %55 : vector<1x128xf32> to vector<16x128xf32>
    %57 = arith.addf %54, %56 : vector<16x128xf32>
    %cst_33 = arith.constant dense<0.000000e+00> : vector<128xf32>
    %58 = vector.multi_reduction <add>, %57, %cst_33 [0] : vector<16x128xf32> to vector<128xf32>
    %59 = vector.shape_cast %58 : vector<128xf32> to vector<1x128xf32>
    %cst_34 = arith.constant 1.600000e+01 : f32
    %60 = vector.broadcast %cst_34 : f32 to vector<1x128xf32>
    %61 = arith.divf %59, %60 : vector<1x128xf32>
    %62 = vector.broadcast %61 : vector<1x128xf32> to vector<16x128xf32>
    %63 = arith.subf %57, %62 : vector<16x128xf32>
    %64 = arith.mulf %63, %63 : vector<16x128xf32>
    %cst_35 = arith.constant dense<0.000000e+00> : vector<128xf32>
    %65 = vector.multi_reduction <add>, %64, %cst_35 [0] : vector<16x128xf32> to vector<128xf32>
    %66 = vector.shape_cast %65 : vector<128xf32> to vector<1x128xf32>
    %cst_36 = arith.constant 1.600000e+01 : f32
    %67 = vector.broadcast %cst_36 : f32 to vector<1x128xf32>
    %68 = arith.divf %66, %67 : vector<1x128xf32>
    %c6 = arith.constant 6 : index
    %c0_37 = arith.constant 0 : index
    %69 = vector.load %arg13[%c6, %c0_37] : memref<11x128xf32, #tpu.memory_space<vmem>>, vector<1x128xf32>
    %cst_38 = arith.constant 9.99999974E-6 : f32
    %70 = vector.broadcast %cst_38 : f32 to vector<1x128xf32>
    %71 = arith.addf %68, %70 : vector<1x128xf32>
    %72 = math.rsqrt %71 : vector<1x128xf32>
    %73 = arith.mulf %69, %72 : vector<1x128xf32>
    %74 = vector.broadcast %61 : vector<1x128xf32> to vector<16x128xf32>
    %75 = arith.subf %57, %74 : vector<16x128xf32>
    %76 = vector.broadcast %73 : vector<1x128xf32> to vector<16x128xf32>
    %77 = arith.mulf %75, %76 : vector<16x128xf32>
    %c7 = arith.constant 7 : index
    %c0_39 = arith.constant 0 : index
    %78 = vector.load %arg13[%c7, %c0_39] : memref<11x128xf32, #tpu.memory_space<vmem>>, vector<1x128xf32>
    %79 = vector.broadcast %78 : vector<1x128xf32> to vector<16x128xf32>
    %80 = arith.addf %77, %79 : vector<16x128xf32>
    %c0_40 = arith.constant 0 : index
    %c0_41 = arith.constant 0 : index
    %c0_42 = arith.constant 0 : index
    %81 = vector.load %arg3[%c0_40, %c0_41, %c0_42] : memref<1x2x16xf32, #tpu.memory_space<vmem>>, vector<1x2x16xf32>
    %82 = vector.shape_cast %81 : vector<1x2x16xf32> to vector<2x16xf32>
    %cst_43 = arith.constant dense<0.000000e+00> : vector<2x128xf32>
    %83 = tpu.matmul %82, %80, %cst_43 {dimension_numbers = #tpu.dot_dimension_numbers<[1], [0], [0], [1], [0, 0, 1, 1], [], []>} : vector<2x16xf32>, vector<16x128xf32>, vector<2x128xf32> -> vector<2x128xf32>
    %84 = vector.shape_cast %80 : vector<16x128xf32> to vector<1x16x128xf32>
    %c0_44 = arith.constant 0 : index
    %c0_45 = arith.constant 0 : index
    %c0_46 = arith.constant 0 : index
    %85 = vector.load %arg4[%c0_44, %c0_45, %c0_46] : memref<1x2x16xf32, #tpu.memory_space<vmem>>, vector<1x2x16xf32>
    %86 = vector.shape_cast %85 : vector<1x2x16xf32> to vector<2x16xf32>
    %87 = vector.shape_cast %86 : vector<2x16xf32> to vector<2x16x1xf32>
    %88 = vector.broadcast %84 : vector<1x16x128xf32> to vector<2x16x128xf32>
    %89 = vector.broadcast %87 : vector<2x16x1xf32> to vector<2x16x128xf32>
    %90 = arith.addf %88, %89 : vector<2x16x128xf32>
    %cst_47 = arith.constant dense<0xFF800000> : vector<2x128xf32>
    %91 = vector.multi_reduction <maximumf>, %90, %cst_47 [1] : vector<2x16x128xf32> to vector<2x128xf32>
    %c0_48 = arith.constant 0 : index
    %c0_49 = arith.constant 0 : index
    %c0_50 = arith.constant 0 : index
    %92 = vector.load %arg5[%c0_48, %c0_49, %c0_50] : memref<1x2x128xf32, #tpu.memory_space<vmem>>, vector<1x2x128xf32>
    %93 = vector.shape_cast %92 : vector<1x2x128xf32> to vector<2x128xf32>
    %94 = tpu.concatenate %83, %91, %93 in 1 : vector<2x128xf32>, vector<2x128xf32>, vector<2x128xf32> -> vector<2x384xf32>
    %95 = arith.truncf %94 : vector<2x384xf32> to vector<2x384xbf16>
    %c0_51 = arith.constant 0 : index
    %c0_52 = arith.constant 0 : index
    %96 = vector.load %arg10[%c0_51, %c0_52] : memref<384x128xbf16, #tpu.memory_space<vmem>>, vector<384x128xbf16>
    %cst_53 = arith.constant dense<0.000000e+00> : vector<2x128xf32>
    %97 = tpu.matmul %95, %96, %cst_53 {dimension_numbers = #tpu.dot_dimension_numbers<[1], [0], [0], [1], [0, 0, 1, 1], [], []>} : vector<2x384xbf16>, vector<384x128xbf16>, vector<2x128xf32> -> vector<2x128xf32>
    %c8 = arith.constant 8 : index
    %c0_54 = arith.constant 0 : index
    %98 = vector.load %arg13[%c8, %c0_54] : memref<11x128xf32, #tpu.memory_space<vmem>>, vector<1x128xf32>
    %99 = vector.broadcast %98 : vector<1x128xf32> to vector<2x128xf32>
    %100 = arith.addf %97, %99 : vector<2x128xf32>
    %cst_55 = arith.constant 0.000000e+00 : f32
    %101 = vector.broadcast %cst_55 : f32 to vector<2x128xf32>
    %102 = arith.maximumf %100, %101 : vector<2x128xf32>
    %103 = arith.truncf %102 : vector<2x128xf32> to vector<2x128xbf16>
    %c0_56 = arith.constant 0 : index
    %c0_57 = arith.constant 0 : index
    %104 = vector.load %arg11[%c0_56, %c0_57] : memref<128x128xbf16, #tpu.memory_space<vmem>>, vector<128x128xbf16>
    %cst_58 = arith.constant dense<0.000000e+00> : vector<2x128xf32>
    %105 = tpu.matmul %103, %104, %cst_58 {dimension_numbers = #tpu.dot_dimension_numbers<[1], [0], [0], [1], [0, 0, 1, 1], [], []>} : vector<2x128xbf16>, vector<128x128xbf16>, vector<2x128xf32> -> vector<2x128xf32>
    %c9 = arith.constant 9 : index
    %c0_59 = arith.constant 0 : index
    %106 = vector.load %arg13[%c9, %c0_59] : memref<11x128xf32, #tpu.memory_space<vmem>>, vector<1x128xf32>
    %107 = vector.broadcast %106 : vector<1x128xf32> to vector<2x128xf32>
    %108 = arith.addf %105, %107 : vector<2x128xf32>
    %cst_60 = arith.constant 0.000000e+00 : f32
    %109 = vector.broadcast %cst_60 : f32 to vector<2x128xf32>
    %110 = arith.maximumf %108, %109 : vector<2x128xf32>
    %111 = arith.truncf %110 : vector<2x128xf32> to vector<2x128xbf16>
    %c0_61 = arith.constant 0 : index
    %c0_62 = arith.constant 0 : index
    %112 = vector.load %arg12[%c0_61, %c0_62] : memref<128x128xbf16, #tpu.memory_space<vmem>>, vector<128x128xbf16>
    %cst_63 = arith.constant dense<0.000000e+00> : vector<2x128xf32>
    %113 = tpu.matmul %111, %112, %cst_63 {dimension_numbers = #tpu.dot_dimension_numbers<[1], [0], [0], [1], [0, 0, 1, 1], [], []>} : vector<2x128xbf16>, vector<128x128xbf16>, vector<2x128xf32> -> vector<2x128xf32>
    %c10 = arith.constant 10 : index
    %c0_64 = arith.constant 0 : index
    %114 = vector.load %arg13[%c10, %c0_64] : memref<11x128xf32, #tpu.memory_space<vmem>>, vector<1x128xf32>
    %115 = vector.broadcast %114 : vector<1x128xf32> to vector<2x128xf32>
    %116 = arith.addf %113, %115 : vector<2x128xf32>
    %c0_65 = arith.constant 0 : index
    %c0_66 = arith.constant 0 : index
    %c0_67 = arith.constant 0 : index
    %117 = vector.load %arg14[%c0_65, %c0_66, %c0_67] : memref<1x2x128xf32, #tpu.memory_space<vmem>>, vector<1x2x128xf32>
    %118 = vector.shape_cast %117 : vector<1x2x128xf32> to vector<2x128xf32>
    %119 = vector.shape_cast %116 : vector<2x128xf32> to vector<1x2x128xf32>
    tpu.vector_store %arg14[%c0_65, %c0_66, %c0_67], %119 {strides = array<i32>} : memref<1x2x128xf32, #tpu.memory_space<vmem>>, vector<1x2x128xf32>,
    return
  }
  func.func @transform_0(%arg0: i32) -> (i32, i32, i32) {
    %c0_i32 = arith.constant 0 : i32
    %c0_i32_0 = arith.constant 0 : i32
    %c0_i32_1 = arith.constant 0 : i32
    return %arg0, %c0_i32, %c0_i32_0 : i32, i32, i32
  }
  func.func @transform_1(%arg0: i32) -> (i32, i32, i32) {
    %c0_i32 = arith.constant 0 : i32
    %c0_i32_0 = arith.constant 0 : i32
    %c0_i32_1 = arith.constant 0 : i32
    return %arg0, %c0_i32, %c0_i32_0 : i32, i32, i32
  }
  func.func @transform_2(%arg0: i32) -> (i32, i32, i32) {
    %c0_i32 = arith.constant 0 : i32
    %c0_i32_0 = arith.constant 0 : i32
    %c0_i32_1 = arith.constant 0 : i32
    return %arg0, %c0_i32, %c0_i32_0 : i32, i32, i32
  }
  func.func @transform_3(%arg0: i32) -> (i32, i32, i32) {
    %c0_i32 = arith.constant 0 : i32
    %c0_i32_0 = arith.constant 0 : i32
    %c0_i32_1 = arith.constant 0 : i32
    return %arg0, %c0_i32, %c0_i32_0 : i32, i32, i32
  }
  func.func @transform_4(%arg0: i32) -> (i32, i32, i32) {
    %c0_i32 = arith.constant 0 : i32
    %c0_i32_0 = arith.constant 0 : i32
    %c0_i32_1 = arith.constant 0 : i32
    return %arg0, %c0_i32, %c0_i32_0 : i32, i32, i32
  }
  func.func @transform_5(%arg0: i32) -> (i32, i32) {
    %c0_i32 = arith.constant 0 : i32
    %c0_i32_0 = arith.constant 0 : i32
    %c0_i32_1 = arith.constant 0 : i32
    return %c0_i32, %c0_i32_0 : i32, i32
  }
  func.func @transform_6(%arg0: i32) -> (i32, i32) {
    %c0_i32 = arith.constant 0 : i32
    %c0_i32_0 = arith.constant 0 : i32
    %c0_i32_1 = arith.constant 0 : i32
    return %c0_i32, %c0_i32_0 : i32, i32
  }
  func.func @transform_7(%arg0: i32) -> (i32, i32) {
    %c0_i32 = arith.constant 0 : i32
    %c0_i32_0 = arith.constant 0 : i32
    %c0_i32_1 = arith.constant 0 : i32
    return %c0_i32, %c0_i32_0 : i32, i32
  }
  func.func @transform_8(%arg0: i32) -> (i32, i32) {
    %c0_i32 = arith.constant 0 : i32
    %c0_i32_0 = arith.constant 0 : i32
    %c0_i32_1 = arith.constant 0 : i32
    return %c0_i32, %c0_i32_0 : i32, i32
  }
  func.func @transform_9(%arg0: i32) -> (i32, i32) {
    %c0_i32 = arith.constant 0 : i32
    %c0_i32_0 = arith.constant 0 : i32
    %c0_i32_1 = arith.constant 0 : i32
    return %c0_i32, %c0_i32_0 : i32, i32
  }
  func.func @transform_10(%arg0: i32) -> (i32, i32) {
    %c0_i32 = arith.constant 0 : i32
    %c0_i32_0 = arith.constant 0 : i32
    %c0_i32_1 = arith.constant 0 : i32
    return %c0_i32, %c0_i32_0 : i32, i32
  }
  func.func @transform_11(%arg0: i32) -> (i32, i32) {
    %c0_i32 = arith.constant 0 : i32
    %c0_i32_0 = arith.constant 0 : i32
    %c0_i32_1 = arith.constant 0 : i32
    return %c0_i32, %c0_i32_0 : i32, i32
  }
  func.func @transform_12(%arg0: i32) -> (i32, i32) {
    %c0_i32 = arith.constant 0 : i32
    %c0_i32_0 = arith.constant 0 : i32
    %c0_i32_1 = arith.constant 0 : i32
    return %c0_i32, %c0_i32_0 : i32, i32
  }
  func.func @transform_13(%arg0: i32) -> (i32, i32, i32) {
    %c0_i32 = arith.constant 0 : i32
    %c0_i32_0 = arith.constant 0 : i32
    %c0_i32_1 = arith.constant 0 : i32
    return %arg0, %c0_i32, %c0_i32_0 : i32, i32, i32
  }
}

</mosaic_0001>

<bundles_post_ra>
// kernel: synthnet_forward.1
= control target key start
LH: loop header
LB: loop body
LE: loop exit
PB: predicated region body
PF: predicated region fallthrough
CT: control target
= control target key end

     0   :  { %s3349_s0 = inlined_call_operand.vmem [shape: f32[4,16,3], index: 0, kind: input, shape index: {}]   ;;  %s3350_s1 = inlined_call_operand.vmem [shape: f32[4,16,16], index: 1, kind: input, shape index: {}]   ;;  %s3351_s2 = inlined_call_operand.vmem [shape: f32[4,2,16], index: 2, kind: input, shape index: {}]   ;;  %s3352_s3 = inlined_call_operand.vmem [shape: f32[4,2,16], index: 3, kind: input, shape index: {}]   ;;  %s3353_s4 = inlined_call_operand.vmem [shape: f32[4,2,128], index: 4, kind: input, shape index: {}]   ;;  %s3354_s5 = inlined_call_operand.vmem [shape: f32[3,128], index: 5, kind: input, shape index: {}]   ;;  %s3355_s6 = inlined_call_operand.hbm [shape: bf16[128,128], index: 6, kind: input, shape index: {}]   ;;  %s3356_s7 = inlined_call_operand.hbm [shape: bf16[128,128], index: 7, kind: input, shape index: {}]   ;;  %s3357_s8 = inlined_call_operand.hbm [shape: bf16[128,128], index: 8, kind: input, shape index: {}]   ;;  %s3358_s9 = inlined_call_operand.hbm [shape: bf16[384,128], index: 9, kind: input, shape index: {}]   ;;  %s3359_s10 = inlined_call_operand.hbm [shape: bf16[128,128], index: 10, kind: input, shape index: {}]   ;;  %s3360_s11 = inlined_call_operand.hbm [shape: bf16[128,128], index: 11, kind: input, shape index: {}]   ;;  %s3361_s12 = inlined_call_operand.vmem [shape: f32[11,128], index: 12, kind: input, shape index: {}]   ;;  %s3362_s13 = inlined_call_operand.hbm [shape: f32[4,2,128], index: 13, kind: output, shape index: {}]  }
   0x1   :  { %3376 = sst [smem:[#allocation27_spill]] %s3356_s7 }
   0x2   :  { %3377 = sst [smem:[#allocation28_spill]] %s3362_s13 }
   0x3   :  { %18 = vsyncpa [#allocation3], 0 }
   0x4   :  { %19 = vsyncpa [#allocation6], 0 }
   0x5   :  { %20 = vsyncpa [#allocation9], 0 }
   0x6   :  { %21 = vsyncpa [#allocation12], 0 }
   0x7   :  { %22 = vsyncpa [#allocation4], 0 }
   0x8   :  { %24 = vsyncpa [#allocation4 + $0x1], 0  ;;  %s2932_s25 = smov 0   ;;  %s2934_s26 = smov 0  }
   0x9   :  { %s2936_s27 = smov 0   ;;  %s2938_s28 = smov 0  }
   0xa LB: > { %3378 = sst [smem:[#allocation19_spill]] %s2836_s25  ;;  %s2953_s29 = sadd.s32 4294967295, %s2848_s28   ;;  %s2848_s28 = sphi %s2938_s28, %s3409_s28   ;;  %s2844_s27 = sphi %s2936_s27, %s3412_s27   ;;  %s2840_s26 = sphi %s2934_s26, %s3411_s26   ;;  %s2836_s25 = sphi %s2932_s25, %s3410_s25  }
   0xb   : > { %3379 = sst [smem:[#allocation20_spill]] %s2840_s26  ;;  %s2071_s30 = sadd.s32 4294967294, %s2848_s28  }
   0xc   : > { %3380 = sst [smem:[#allocation21_spill]] %s2844_s27  ;;  %s2957_s14 = sadd.s32 1, %s2848_s28  }
   0xd   : > { %3381 = sst [smem:[#allocation22_spill]] %s2848_s28  ;;  %s335_s15 = sadd.s32 1, %s2844_s27 }
   0xe   : > { %3382 = sst [smem:[#allocation23_spill]] %s2957_s14  ;;  %s332_s16 = ssub.s32 %s2848_s28, %s2957_s14 }
   0xf   : > { %p345_p0 = scmp.ne.s32.totalorder %s2844_s27, %s2840_s26  ;;  %p333_p1 = scmp.eq.s32.totalorder %s332_s16, 0 }
  0x10   : > { %p346_p2 = scmp.eq.s32.totalorder %s2953_s29, 3  ;;  %p351_p3 = scmp.ne.s32.totalorder %s2840_s26, %s2836_s25 }
  0x11   : > { %p352_p4 = scmp.eq.s32.totalorder %s2071_s30, 3  ;;  %p2072_p7 = scmp.ge.s32.totalorder %s2848_s28, 1 }
  0x12   : > { %s2968_s17 = scalar_select %p333_p1, %s2844_s27, %s335_s15  }
  0x13   : > { %p2970_p5 = por %p346_p2, %p345_p0  ;;  %p2974_p6 = por %p352_p4, %p351_p3 }
  0x14   : > { %3383 = sst [smem:[#allocation24_spill]] %s2968_s17  ;;  %p359_p8 = scmp.lt.s32.totalorder %s2848_s28, 5 }
  0x15   : > { %s3384_s18 = scalar_select %p2970_p5, 1, 0 }
  0x16   : > { %s3386_s19 = scalar_select %p2974_p6, 1, 0 }
  0x17   : > { %3385 = sst [smem:[#allocation25_spill]] %s3384_s18  ;;  %p3368_p9 = scmp.eq.s32.totalorder %s2953_s29, 0 }
  0x18   : > { %3387 = sst [smem:[#allocation26_spill]] %s3386_s19  ;;  %p2981_p10 = pnand %p2072_p7, %p359_p8 }
  0x19   : > { %s2850_s21 = smov [#allocation5]   ;;  %s2851_s24 = smov [#allocation8]  }
  0x1a   : > { %s3388_s20 = scalar_select %p2981_p10, 1, 0 }
  0x1b   : > { %p2455_p11 = pneg %p2981_p10  ;;  %s387_s22 = sshll.u32 %s2850_s21, 4  ;;  %s2987_s22 = int_to_ptr.vmem [resolvable:$true] %s387_s22 }
  0x1c   : > { %s413_s30 = sshll.u32 %s2851_s24, 4  ;;  %s2852_s15 = smov [#allocation2]   ;;  %s2995_s30 = int_to_ptr.vmem [resolvable:$true] %s413_s30 }
  0x1d   : > { %p2991_p12 = pnand %p3368_p9, %p2455_p11  ;;  %s2997_s16 = sshll.u32 %s2852_s15, 4  ;;  %s375_s16 = int_to_ptr.vmem [resolvable:$true] %s2997_s16 }
  0x1e   : > { %s3390_s7 = sld [smem:[#allocation27_spill]] }
  0x1f   : > { %p3007_p0 = pneg %p2991_p12 }
  0x24   : > { %s2602_s14 = scalar_lea.hbm %s3390_s7, 1024 }
  0x25   : > { %p2603_p13 = scmp.ne.s32.totalorder %s3390_s7, %s2602_s14  ;;  %p2609_p3 = scmp.lt.u32.totalorder %s2602_s14, %s3390_s7 }
  0x27   : > { %p2605_p1 = pnand %p3007_p0, %p2603_p13 }
  0x29   : > { %p2606_p2 = pneg %p2605_p1 }
  0x2b   : > { %p2611_p4 = pnand %p2609_p3, %p2606_p2 }
  0x2d   : > { %2614 = shalt.err (!%p2611_p4)
}
  0x2e   : > { %s2615_s27 = scalar_lea.vmem %s2987_s22, 1024  ;;  %p2623_p9 = scmp.lt.s32.totalorder %s2987_s22, %s2987_s22 }
  0x2f   : > { %p2616_p7 = scmp.ne.s32.totalorder %s2987_s22, %s2615_s27  ;;  %p2624_p6 = scmp.lt.s32.totalorder %s2615_s27, %s2615_s27 }
  0x31   : > { %p2618_p8 = pnand %p2616_p7, %p3007_p0  ;;  %p2625_p13 = por %p2624_p6, %p2623_p9 }
  0x33   : > { %p2619_p11 = pneg %p2618_p8 }
  0x35   : > { %p2626_p1 = pnand %p2625_p13, %p2619_p11 }
  0x37   : > { %2629 = shalt.err (!%p2626_p1)
}
  0x38   : > { %s2853_s17 = smov 64   ;;  %s2854_s14 = smov 4  }
  0x39   : > { %2461 = dma.hbm_to_vmem [thread:$0]  (!%p2991_p12), %s3390_s7, 1024, %s2987_s22, [#allocation6], %s2853_s17, %s2853_s17, %s2854_s14  }
  0x3a   : > { %s2630_s27 = scalar_lea.hbm %s3358_s9, 3072 }
  0x3b   : > { %p2631_p6 = scmp.ne.s32.totalorder %s3358_s9, %s2630_s27  ;;  %p2637_p3 = scmp.lt.u32.totalorder %s2630_s27, %s3358_s9 }
  0x3d   : > { %p2633_p9 = pnand %p2631_p6, %p3007_p0 }
  0x3f   : > { %p2634_p2 = pneg %p2633_p9 }
  0x41   : > { %p2639_p4 = pnand %p2637_p3, %p2634_p2 }
  0x43   : > { %2642 = shalt.err (!%p2639_p4)
}
  0x44   : > { %s2643_s22 = scalar_lea.vmem %s2995_s30, 3072  ;;  %p2651_p13 = scmp.lt.s32.totalorder %s2995_s30, %s2995_s30 }
  0x45   : > { %p2644_p7 = scmp.ne.s32.totalorder %s2995_s30, %s2643_s22  ;;  %p2652_p1 = scmp.lt.s32.totalorder %s2643_s22, %s2643_s22 }
  0x47   : > { %p2646_p8 = pnand %p2644_p7, %p3007_p0  ;;  %p2653_p6 = por %p2652_p1, %p2651_p13 }
  0x49   : > { %p2647_p11 = pneg %p2646_p8 }
  0x4b   : > { %p2654_p9 = pnand %p2653_p6, %p2647_p11 }
  0x4d   : > { %2657 = shalt.err (!%p2654_p9)
}
  0x4e   : > { %2467 = dma.hbm_to_vmem [thread:$0]  (!%p2991_p12), %s3358_s9, 3072, %s2995_s30, [#allocation9], %s2853_s17, %s2853_s17, %s2854_s14  }
  0x4f   : > { %s2658_s19 = scalar_lea.hbm %s3355_s6, 1024 }
  0x50   : > { %p2659_p2 = scmp.ne.s32.totalorder %s3355_s6, %s2658_s19  ;;  %p2665_p7 = scmp.lt.u32.totalorder %s2658_s19, %s3355_s6 }
  0x52   : > { %p2661_p3 = pnand %p2659_p2, %p3007_p0 }
  0x54   : > { %p2662_p4 = pneg %p2661_p3 }
  0x56   : > { %p2667_p8 = pnand %p2665_p7, %p2662_p4 }
  0x58   : > { %2670 = shalt.err (!%p2667_p8)
}
  0x59   : > { %s2671_s22 = scalar_lea.vmem %s375_s16, 1024  ;;  %p2679_p6 = scmp.lt.s32.totalorder %s375_s16, %s375_s16 }
  0x5a   : > { %p2672_p11 = scmp.ne.s32.totalorder %s375_s16, %s2671_s22  ;;  %p2680_p9 = scmp.lt.s32.totalorder %s2671_s22, %s2671_s22 }
  0x5c   : > { %p2674_p13 = pnand %p2672_p11, %p3007_p0  ;;  %p2681_p5 = por %p2680_p9, %p2679_p6 }
  0x5e   : > { %p2675_p1 = pneg %p2674_p13 }
  0x60   : > { %p2682_p10 = pnand %p2681_p5, %p2675_p1 }
  0x62   : > { %2685 = shalt.err (!%p2682_p10)
}
  0x63   : > { %2458 = dma.hbm_to_vmem [thread:$0]  (!%p2991_p12), %s3355_s6, 1024, %s375_s16, [#allocation3], %s2853_s17, %s2853_s17, %s2854_s14  }
  0x64   : > { %s2855_s26 = smov [#allocation7]   ;;  %s2856_s18 = smov [#allocation10]  }
  0x65   : > { %s400_s28 = sshll.u32 %s2855_s26, 4  ;;  %s426_s19 = sshll.u32 %s2856_s18, 4  ;;  %s401_s28 = int_to_ptr.vmem [resolvable:$true] %s400_s28  ;;  %s427_s19 = int_to_ptr.vmem [resolvable:$true] %s426_s19 }
  0x66   : > { %s2686_s15 = scalar_lea.hbm %s3357_s8, 1024 }
  0x67   : > { %p2687_p5 = scmp.ne.s32.totalorder %s3357_s8, %s2686_s15  ;;  %p2693_p3 = scmp.lt.u32.totalorder %s2686_s15, %s3357_s8 }
  0x69   : > { %p2689_p10 = pnand %p2687_p5, %p3007_p0 }
  0x6b   : > { %p2690_p2 = pneg %p2689_p10 }
  0x6d   : > { %p2695_p4 = pnand %p2693_p3, %p2690_p2 }
  0x6f   : > { %2698 = shalt.err (!%p2695_p4)
}
  0x70   : > { %s2699_s16 = scalar_lea.vmem %s401_s28, 1024  ;;  %p2707_p13 = scmp.lt.s32.totalorder %s401_s28, %s401_s28 }
  0x71   : > { %p2700_p7 = scmp.ne.s32.totalorder %s401_s28, %s2699_s16  ;;  %p2708_p1 = scmp.lt.s32.totalorder %s2699_s16, %s2699_s16 }
  0x73   : > { %p2702_p8 = pnand %p2700_p7, %p3007_p0  ;;  %p2709_p6 = por %p2708_p1, %p2707_p13 }
  0x75   : > { %p2703_p11 = pneg %p2702_p8 }
  0x77   : > { %p2710_p9 = pnand %p2709_p6, %p2703_p11 }
  0x79   : > { %2713 = shalt.err (!%p2710_p9)
}
  0x7a   : > { %2464 = dma.hbm_to_vmem [thread:$0]  (!%p2991_p12), %s3357_s8, 1024, %s401_s28, [#allocation6], %s2853_s17, %s2853_s17, %s2854_s14  }
  0x7b   : > { %s2714_s21 = scalar_lea.hbm %s3359_s10, 1024 }
  0x7c   : > { %p2715_p5 = scmp.ne.s32.totalorder %s3359_s10, %s2714_s21  ;;  %p2721_p3 = scmp.lt.u32.totalorder %s2714_s21, %s3359_s10 }
  0x7e   : > { %p2717_p10 = pnand %p2715_p5, %p3007_p0 }
  0x80   : > { %p2718_p2 = pneg %p2717_p10 }
  0x82   : > { %p2723_p4 = pnand %p2721_p3, %p2718_p2 }
  0x84   : > { %2726 = shalt.err (!%p2723_p4)
}
  0x85   : > { %s2727_s30 = scalar_lea.vmem %s427_s19, 1024  ;;  %p2735_p13 = scmp.lt.s32.totalorder %s427_s19, %s427_s19 }
  0x86   : > { %p2728_p7 = scmp.ne.s32.totalorder %s427_s19, %s2727_s30  ;;  %p2736_p1 = scmp.lt.s32.totalorder %s2727_s30, %s2727_s30 }
  0x88   : > { %p2730_p8 = pnand %p2728_p7, %p3007_p0  ;;  %p2737_p6 = por %p2736_p1, %p2735_p13 }
  0x8a   : > { %p2731_p11 = pneg %p2730_p8 }
  0x8c   : > { %p2738_p9 = pnand %p2737_p6, %p2731_p11 }
  0x8e   : > { %2741 = shalt.err (!%p2738_p9)
}
  0x8f   : > { %2470 = dma.hbm_to_vmem [thread:$0]  (!%p2991_p12), %s3359_s10, 1024, %s427_s19, [#allocation9], %s2853_s17, %s2853_s17, %s2854_s14  }
  0x90   : > { %s2857_s7 = smov [#allocation11]   ;;  %s2742_s21 = scalar_lea.hbm %s3360_s11, 1024 }
  0x91   : > { %s439_s13 = sshll.u32 %s2857_s7, 4  ;;  %p2743_p5 = scmp.ne.s32.totalorder %s3360_s11, %s2742_s21  ;;  %s440_s13 = int_to_ptr.vmem [resolvable:$true] %s439_s13 }
  0x92   : > { %p2749_p3 = scmp.lt.u32.totalorder %s2742_s21, %s3360_s11 }
  0x93   : > { %p2745_p10 = pnand %p2743_p5, %p3007_p0 }
  0x95   : > { %p2746_p2 = pneg %p2745_p10 }
  0x97   : > { %p2751_p4 = pnand %p2749_p3, %p2746_p2 }
  0x99   : > { %2754 = shalt.err (!%p2751_p4)
}
  0x9a   : > { %s2755_s19 = scalar_lea.vmem %s440_s13, 1024  ;;  %p2763_p13 = scmp.lt.s32.totalorder %s440_s13, %s440_s13 }
  0x9b   : > { %p2756_p7 = scmp.ne.s32.totalorder %s440_s13, %s2755_s19  ;;  %p2764_p1 = scmp.lt.s32.totalorder %s2755_s19, %s2755_s19 }
  0x9d   : > { %p2758_p8 = pnand %p2756_p7, %p3007_p0  ;;  %p2765_p6 = por %p2764_p1, %p2763_p13 }
  0x9f   : > { %p2759_p11 = pneg %p2758_p8 }
  0xa1   : > { %p2766_p9 = pnand %p2765_p6, %p2759_p11 }
  0xa3   : > { %2769 = shalt.err (!%p2766_p9)
}
  0xa4   : > { %2473 = dma.hbm_to_vmem [thread:$0]  (!%p2991_p12), %s3360_s11, 1024, %s440_s13, [#allocation12], %s2853_s17, %s2853_s17, %s2854_s14  }
  0xa5   : > { %p3392_p5 = scmp.ne.s32.totalorder %s3388_s20, 0 }
  0xa6   : > { %p3393_p0 = scmp.eq.s32.totalorder (!%p3392_p5), %s2953_s29, 0 }
  0xa7   : > { %495 = sbr.rel (%p3392_p5) target bundleno = 2508 (0x9cc), region = 72 }
  0xae   : > { %2815 = dma.done.wait (%p3393_p0), [#allocation3], 1024   ;;  %p3394_p10 = pmov %p3393_p0 }
  0xaf   : > { %p3395_p2 = pmov %p3393_p0 }
  0xb0   : > { %2817 = vsyncadd (%p3394_p10), [#allocation3], 4294966272 }
  0xb1   : > { %2819 = dma.done.wait (%p3395_p2), [#allocation6], 2048   ;;  %p3396_p3 = pmov %p3393_p0 }
  0xb2   : > { %p3397_p4 = pmov %p3393_p0 }
  0xb3   : > { %2821 = vsyncadd (%p3396_p3), [#allocation6], 4294965248 }
  0xb4   : > { %2823 = dma.done.wait (%p3397_p4), [#allocation9], 4096   ;;  %p3398_p12 = pmov %p3393_p0 }
  0xb5   : > { %p3399_p7 = pmov %p3393_p0 }
  0xb6   : > { %2825 = vsyncadd (%p3398_p12), [#allocation9], 4294963200 }
  0xb7   : > { %2827 = dma.done.wait (%p3399_p7), [#allocation12], 1024   ;;  %p3400_p8 = pmov %p3393_p0 }
  0xb8   : > { %p576_p11 = scmp.lt.s32.totalorder %s2953_s29, 3  ;;  %vm603_vm0 = vcmask 130048   ;;  %v685_v5 = vld [vmem:[%s3354_s5] sm:$0x7]  ;;  %vm698_vm1 = vcmask 1042432   ;;  %v2858_v7 = vmov 0.0   ;;  %v915_v53 = vlaneseq }
  0xb9   : > { %2829 = vsyncadd (%p3400_p8), [#allocation12], 4294966272  ;;  %v2534_v6 = vld [vmem:[#allocation2] sm:$0xff]   ;;  %2284 = vmatprep.subr.bf16.mxu1 %v2858_v7  ;;  %v2535_v8 = vld [vmem:[#allocation2 + $0x8] sm:$0xff]   ;;  %vm691_vm2 = vcmask 23552   ;;  %vm2859_vm3 = vmmov 0  }
  0xba   : > { %s3162_s25 = scalar_select %p576_p11, %s2953_s29, 3  ;;  %2285 = vmatpush3.bf16.msra.mxu1 %v2534_v6  ;;  %v2536_v9 = vld [vmem:[#allocation2 + $0x10] sm:$0xff]   ;;  %v2537_v10 = vld [vmem:[#allocation2 + $0x18] sm:$0xff]   ;;  %v2538_v11 = vld [vmem:[#allocation2 + $0x20] sm:$0xff]   ;;  %2300 = vmatprep.mubr.msk.bf16.mxu1 %vm2859_vm3, %v2858_v7  ;;  %v3199_v54 = vshrl.u32 %v915_v53, 7  ;;  %vm1384_vm4 = vcmask 1041409  }
  0xbb   : > { %2286 = vmatprep.subr.bf16.mxu1 %v2858_v7  ;;  %v2539_v12 = vld [vmem:[#allocation2 + $0x28] sm:$0xff]   ;;  %v2540_v15 = vld [vmem:[#allocation2 + $0x30] sm:$0xff]   ;;  %v2541_v16 = vld [vmem:[#allocation2 + $0x38] sm:$0xff]   ;;  %s3401_s17 = sld [smem:[#allocation20_spill]]  ;;  %s3402_s18 = sld [smem:[#allocation25_spill]] }
  0xbc   : > { %s2180_s20 = sshll.u32 %s3162_s25, 4  ;;  %v2097_v17 = vld [vmem:[%s3361_s12] ss:$0 sm:$0xff]  ;;  %v2101_v25 = vld [vmem:[%s3361_s12 + $0x1] ss:$0 sm:$0xff]  ;;  %v3205_v56 = vsub.s32 0, %v3199_v54 }
  0xbd   : > { %s580_s14 = scalar_lea.vmem %s3349_s0, %s2180_s20  ;;  %s585_s13 = scalar_lea.vmem %s3350_s1, %s2180_s20  ;;  %v911_v55 = vld [vmem:[%s3361_s12 + $0x2] sm:$0x1]  ;;  %v2110_v60 = vld [vmem:[%s3361_s12 + $0x3] ss:$0 sm:$0xff]  ;;  %v2543_v6 = vld [vmem:[#allocation5 + $0x8] sm:$0xff]  }
  0xbe   : > { %v601_v0 = vld [vmem:[%s580_s14] sm:$0xff]  ;;  %v602_v1 = vld [vmem:[%s580_s14 + $0x8] sm:$0xff]  ;;  %2287 = vmatpush3.bf16.msra.mxu1 %v2535_v8  ;;  %v2544_v8 = vld [vmem:[#allocation5 + $0x10] sm:$0xff]   ;;  %s3234_s20 = sshll.u32 %s3162_s25, 1  ;;  %s2177_s21 = sshll.u32 %s2953_s29, 5 }
  0xbf   : > { %v599_v2 = vld [vmem:[%s585_s13] sm:$0xff]  ;;  %v2418_v3 = vpack.c.bf16 %v602_v1, %v601_v0  ;;  %v3172_v4 = vld [vmem:[%s585_s13 + $0x8] sm:$0xff]  ;;  %2288 = vmatprep.subr.bf16.mxu1 %v2858_v7  ;;  %s593_s14 = scalar_lea.vmem %s3352_s3, %s3234_s20  ;;  %s589_s22 = scalar_lea.vmem %s3351_s2, %s3234_s20 }
  0xc0   : > { %2276 = vmatprep.mubr.msk.f32.mxu0 %vm603_vm0, %v599_v2  ;;  %s597_s28 = scalar_lea.vmem %s3353_s4, %s3234_s20  ;;  %s3403_s19 = sld [smem:[#allocation28_spill]] }
  0xc1   : > { %2419 = vmatprep.subr.bf16.mxu0 %v2418_v3  ;;  %s573_s7 = sand.u32 1, %s3401_s17   ;;  %p3404_p1 = scmp.ne.s32.totalorder %s3402_s18, 0 }
  0xc2   : > { %2421 = vmatpush3.bf16.msra.mxu0 %v2418_v3  ;;  %2289 = vmatpush3.bf16.msra.mxu1 %v2536_v9  ;;  %v2545_v9 = vld [vmem:[#allocation5 + $0x18] sm:$0xff]   ;;  %s2087_s25 = sshll.u32 %s573_s7, 1  ;;  %s2861_s20 = smov [#allocation13]  }
  0xc3   : > { %2279 = vmatprep.subr.msk.mxu0 %vm698_vm1, %v685_v5  ;;  %2290 = vmatprep.subr.bf16.mxu1 %v2858_v7  ;;  %s575_s24 = scalar_lea.vmem [#allocation13], %s2087_s25  ;;  %s2774_s23 = sshll.u32 %s2861_s20, 4  ;;  %s2775_s23 = int_to_ptr.vmem [resolvable:$false] %s2774_s23 }
  0xc4   : > { %s1904_s15 = sshll.u32 %s575_s24, 4  ;;  %s2776_s17 = scalar_lea.vmem %s2775_s23, 64  ;;  %s3309_s15 = int_to_ptr.vmem [resolvable:$true] %s1904_s15 }
  0xc5   : > { %2277 = vmatmul.mubr.msk.f32.vlgmr.msra.gmra.mrb[0].mxu0 %vm603_vm0, %v3172_v4  ;;  %s2770_s29 = scalar_lea.vmem %s3309_s15, 32  ;;  %p2777_p5 = scmp.lt.s32.totalorder %s3309_s15, %s2775_s23 }
  0xc6   : > { %2280 = vmatpush3.msk.msra.mxu0 %vm698_vm1, %v685_v5  ;;  %2291 = vmatpush3.bf16.msra.mxu1 %v2537_v10  ;;  %v2542_v5 = vld [vmem:[#allocation5] sm:$0xff]   ;;  %s3307_s30 = scalar_lea.hbm %s3403_s19, %s2177_s21  ;;  %p2771_p13 = scmp.ne.s32.totalorder %s3309_s15, %s2770_s29 }
  0xc7   : > { %2292 = vmatprep.subr.bf16.mxu1 %v2858_v7  ;;  %v2546_v10 = vld [vmem:[#allocation5 + $0x20] sm:$0xff]   ;;  %p2778_p0 = scmp.lt.s32.totalorder %s2776_s17, %s2770_s29 }
  0xc8   : > { %p2772_p6 = pnand %p2771_p13, %p3404_p1 }
  0xc9   : > { %p2779_p10 = por %p2778_p0, %p2777_p5 }
  0xca   : > { %2293 = vmatpush3.bf16.msra.mxu1 %v2538_v11  ;;  %v2548_v11 = vld [vmem:[#allocation5 + $0x30] sm:$0xff]   ;;  %p2773_p9 = pneg %p2772_p6 }
  0xcb   : > { %2294 = vmatprep.subr.bf16.mxu1 %v2858_v7 }
  0xcc   : > { %p2780_p2 = pnand %p2779_p10, %p2773_p9 }
  0xce   : > { %2295 = vmatpush3.bf16.msra.mxu1 %v2539_v12  ;;  %v2549_v12 = vld [vmem:[#allocation5 + $0x38] sm:$0xff]  }
  0xcf   : > { %2296 = vmatprep.subr.bf16.mxu1 %v2858_v7 }
  0xd2   : > { %2297 = vmatpush3.bf16.msra.mxu1 %v2540_v15  ;;  %v2552_v15 = vld [vmem:[#allocation7 + $0x10] sm:$0xff]  }
  0xd3   : > { %2298 = vmatprep.subr.bf16.mxu1 %v2858_v7 }
  0xd6   : > { %2299 = vmatpush3.bf16.msra.mxu1 %v2541_v16  ;;  %v2553_v16 = vld [vmem:[#allocation7 + $0x18] sm:$0xff]  }
  0xd7   : > { %2331 = vmatprep.subr.bf16.mxu1 %v2858_v7 }
 0x198   : > { %v2278_v13 = vpop.f32.mrb[0].mxu0 }
 0x199   : > { %v676_v14 = vpop.f32.mrb[1].mxu0 }
 0x19a   : > { %2281 = vmatprep.mubr.msk.f32.mxu0 %vm691_vm2, %v676_v14  ;;  %v2551_v14 = vld [vmem:[#allocation7 + $0x8] sm:$0xff]  }
 0x19b   : > { %2282 = vmatmul.mubr.msk.f32.vlgmr.msra.gmra.mrb[2].mxu0 %vm691_vm2, %v2278_v13  ;;  %v2550_v13 = vld [vmem:[#allocation7] sm:$0xff]  }
 0x19c   : > { %2308 = vmatprep.mubr.msk.f32.mxu0 %vm603_vm0, %v599_v2 }
 0x26e   : > { %v2283_v18 = vpop.f32.mrb[2].mxu0 }
 0x26f   : > { %v774_v19 = vadd.f32 %v2283_v18, %v2097_v17  ;;  %v768_v20 = vpop.f32.mrb[3].mxu0  ;;  %v2555_v18 = vld [vmem:[#allocation7 + $0x28] sm:$0xff]  }
 0x270   : > { %v769_v21 = vadd.f32 %v2097_v17, %v768_v20  ;;  %v2554_v17 = vld [vmem:[#allocation7 + $0x20] sm:$0xff]  }
 0x271   : > { %v778_v22 = vmax.f32 %v774_v19, 0.0 }
 0x272   : > { %v777_v23 = vmax.f32 %v769_v21, 0.0 }
 0x274   : > { %v779_v24 = vpack.c.bf16 %v778_v22, %v777_v23  ;;  %v2556_v22 = vld [vmem:[#allocation7 + $0x30] sm:$0xff]   ;;  %v2557_v23 = vld [vmem:[#allocation7 + $0x38] sm:$0xff]  }
 0x276   : > { %2301 = vmatmul.mubr.bf16.vlgmr.msra.gmra.mrb[0].mxu1 %v779_v24  ;;  %v1354_v24 = vsub.s32 1, %v3199_v54 }
 0x277   : > { %2347 = vmatprep.mubr.msk.bf16.mxu1 %vm2859_vm3, %v2858_v7  ;;  %2332 = vmatpush3.bf16.msra.mxu1 %v2550_v13 }
 0x278   : > { %2333 = vmatprep.subr.bf16.mxu1 %v2858_v7 }
 0x27b   : > { %2334 = vmatpush3.bf16.msra.mxu1 %v2551_v14 }
 0x27c   : > { %2335 = vmatprep.subr.bf16.mxu1 %v2858_v7 }
 0x27f   : > { %2336 = vmatpush3.bf16.msra.mxu1 %v2552_v15 }
 0x280   : > { %2337 = vmatprep.subr.bf16.mxu1 %v2858_v7 }
 0x283   : > { %2338 = vmatpush3.bf16.msra.mxu1 %v2553_v16 }
 0x284   : > { %2339 = vmatprep.subr.bf16.mxu1 %v2858_v7 }
 0x287   : > { %2340 = vmatpush3.bf16.msra.mxu1 %v2554_v17  ;;  %v2131_v17 = vld [vmem:[%s3361_s12 + $0x7] ss:$0 sm:$0xff] }
 0x288   : > { %2341 = vmatprep.subr.bf16.mxu1 %v2858_v7 }
 0x28b   : > { %2342 = vmatpush3.bf16.msra.mxu1 %v2555_v18 }
 0x28c   : > { %2343 = vmatprep.subr.bf16.mxu1 %v2858_v7 }
 0x28f   : > { %2344 = vmatpush3.bf16.msra.mxu1 %v2556_v22 }
 0x290   : > { %2345 = vmatprep.subr.bf16.mxu1 %v2858_v7 }
 0x293   : > { %2346 = vmatpush3.bf16.msra.mxu1 %v2557_v23 }
 0x294   : > { %2358 = vmatprep.subr.bf16.mxu1 %v2858_v7 }
 0x349   : > { %v883_v26 = vpop.f32.mrb[0].mxu1 }
 0x34a   : > { %v2302_v27 = vpop.f32.mrb[1].mxu1  ;;  %v884_v29 = vadd.f32 %v2101_v25, %v883_v26 }
 0x34b   : > { %v886_v28 = vpop.f32.mrb[2].mxu1 }
 0x34c   : > { %v887_v30 = vadd.f32 %v2101_v25, %v886_v28  ;;  %v2303_v31 = vpop.f32.mrb[3].mxu1  ;;  %v1340_v25 = vld [vmem:[%s593_s14] sm:$0x3]  ;;  %v2113_v28 = vld [vmem:[%s3361_s12 + $0x4] ss:$0 sm:$0xff] }
 0x34d   : > { %v1355_v26 = vrot.slane %v1340_v25, %v1354_v24  ;;  %v1344_v27 = vrot.slane %v1340_v25, %v3205_v56 }
 0x34e   : > { %v890_v32 = vadd.f32 %v887_v30, %v884_v29 }
 0x34f   : > { %1357 = vbcast.lane.b32.xlu1 %v1355_v26, 256  ;;  %1346 = vbcast.lane.b32.xlu0 %v1344_v27, 256 }
 0x350   : > { %v891_v33 = vrot.slane %v890_v32, 4 }
 0x352   : > { %v892_v34 = vadd.f32 %v891_v33, %v890_v32 }
 0x353   : > { %1361 = vbcast.lane.b32.xlu1 %v1355_v26, 264  ;;  %1350 = vbcast.lane.b32.xlu0 %v1344_v27, 264 }
 0x354   : > { %v893_v35 = vrot.slane %v892_v34, 2 }
 0x356   : > { %v894_v36 = vadd.f32 %v893_v35, %v892_v34 }
 0x358   : > { %v895_v37 = vrot.slane %v894_v36, 1 }
 0x35a   : > { %v896_v38 = vadd.f32 %v895_v37, %v894_v36 }
 0x35c   : > { %v898_v39 = vmul.f32 0.0625, %v896_v38  ;;  %v2860_v38 = vmov 0.0|0.0  }
 0x35e   : > { %v899_v40 = vsub.f32 %v884_v29, %v898_v39  ;;  %v900_v41 = vsub.f32 %v887_v30, %v898_v39  ;;  %v2562_v39 = vld [vmem:[#allocation8 + $0x80] sm:$0xff]  }
 0x360   : > { %v901_v42 = vmul.f32 %v899_v40, %v899_v40  ;;  %v902_v43 = vmul.f32 %v900_v41, %v900_v41 }
 0x362   : > { %v903_v44 = vadd.f32 %v902_v43, %v901_v42  ;;  %v2571_v42 = vld [vmem:[#allocation8 + $0x98] sm:$0xff]   ;;  %v2574_v43 = vld [vmem:[#allocation8 + $0xa0] sm:$0xff]  }
 0x364   : > { %v904_v45 = vrot.slane %v903_v44, 4 }
 0x366   : > { %v905_v46 = vadd.f32 %v904_v45, %v903_v44  ;;  %v2577_v44 = vld [vmem:[#allocation8 + $0xa8] sm:$0xff]   ;;  %v2122_v45 = vld [vmem:[%s3361_s12 + $0x5] ss:$0 sm:$0xff] }
 0x368   : > { %v906_v47 = vrot.slane %v905_v46, 2 }
 0x36a   : > { %v907_v48 = vadd.f32 %v906_v47, %v905_v46 }
 0x36c   : > { %v908_v49 = vrot.slane %v907_v48, 1 }
 0x36e   : > { %v909_v50 = vadd.f32 %v908_v49, %v907_v48 }
 0x370   : > { %v910_v51 = vmul.f32 0.0625, %v909_v50 }
 0x372   : > { %v912_v52 = vadd.f32 1e-05, %v910_v51 }
 0x374   : > { %2598 = vrsqrt.f32 %v912_v52 }
 0x37e   : > { %v2599_v57 = vpop.eup %2598 }
 0x37f   : > { %v914_v58 = vmul.f32 %v2599_v57, %v911_v55 }
 0x381   : > { %v918_v59 = vrot.slane %v914_v58, %v3205_v56 }
 0x383   : > { %v920_v61 = vmul.f32 %v918_v59, %v900_v41  ;;  %v919_v62 = vmul.f32 %v918_v59, %v899_v40  ;;  %v2565_v40 = vld [vmem:[#allocation8 + $0x88] sm:$0xff]   ;;  %v2568_v41 = vld [vmem:[#allocation8 + $0x90] sm:$0xff]  }
 0x385   : > { %v926_v63 = vadd.f32 %v2110_v60, %v919_v62  ;;  %v927_v0 = vadd.f32 %v2110_v60, %v920_v61 }
 0x387   : > { %v928_v1 = vmax.f32 %v926_v63, 0.0  ;;  %v929_v2 = vmax.f32 %v927_v0, 0.0 }
 0x389   : > { %v2422_v3 = vpack.c.bf16 %v929_v2, %v928_v1 }
 0x38b   : > { %2423 = vmatprep.subr.bf16.mxu0 %v2422_v3 }
 0x38c   : > { %2425 = vmatpush3.bf16.msra.mxu0 %v2422_v3 }
 0x38d   : > { %2311 = vmatprep.subr.bf16.mxu0 %v2858_v7 }
 0x38f   : > { %2309 = vmatmul.mubr.msk.f32.vlgmr.msra.gmra.mrb[4].mxu0 %vm603_vm0, %v3172_v4  ;;  %v2547_v4 = vld [vmem:[#allocation5 + $0x28] sm:$0xff]  }
 0x390   : > { %2312 = vmatpush3.bf16.msra.mxu0 %v2542_v5  ;;  %2327 = vmatprep.mubr.msk.bf16.mxu0 %vm2859_vm3, %v2858_v7 }
 0x391   : > { %2313 = vmatprep.subr.bf16.mxu0 %v2858_v7 }
 0x394   : > { %2314 = vmatpush3.bf16.msra.mxu0 %v2543_v6 }
 0x395   : > { %2315 = vmatprep.subr.bf16.mxu0 %v2858_v7 }
 0x398   : > { %2316 = vmatpush3.bf16.msra.mxu0 %v2544_v8 }
 0x399   : > { %2317 = vmatprep.subr.bf16.mxu0 %v2858_v7 }
 0x39c   : > { %2318 = vmatpush3.bf16.msra.mxu0 %v2545_v9 }
 0x39d   : > { %2319 = vmatprep.subr.bf16.mxu0 %v2858_v7 }
 0x3a0   : > { %2320 = vmatpush3.bf16.msra.mxu0 %v2546_v10 }
 0x3a1   : > { %2321 = vmatprep.subr.bf16.mxu0 %v2858_v7 }
 0x3a4   : > { %2322 = vmatpush3.bf16.msra.mxu0 %v2547_v4 }
 0x3a5   : > { %2323 = vmatprep.subr.bf16.mxu0 %v2858_v7 }
 0x3a8   : > { %2324 = vmatpush3.bf16.msra.mxu0 %v2548_v11  ;;  %v1249_v11 = vld [vmem:[%s3361_s12 + $0x6] sm:$0x1] }
 0x3a9   : > { %2325 = vmatprep.subr.bf16.mxu0 %v2858_v7 }
 0x3ac   : > { %2326 = vmatpush3.bf16.msra.mxu0 %v2549_v12 }
 0x3ad   : > { %2426 = vmatprep.subr.bf16.mxu0 %v2860_v38  ;;  %v2561_v38 = vld [vmem:[#allocation8 + $0x8] sm:$0xff]  }
 0x3c1   : > { %v1358_v13 = vpop.permute.xlu1 %1357  ;;  %v1347_v14 = vpop.permute.xlu0 %1346 }
 0x462   : > { %v2310_v19 = vpop.f32.mrb[4].mxu0 }
 0x463   : > { %v996_v20 = vpop.f32.mrb[5].mxu0 }
 0x464   : > { %v1005_v21 = vpack.c.bf16 %v2310_v19, %v996_v20  ;;  %v1362_v20 = vpop.permute.xlu1 %1361 }
 0x466   : > { %2328 = vmatmul.mubr.bf16.vlgmr.msra.gmra.mrb[8].mxu0 %v1005_v21  ;;  %v1351_v21 = vpop.permute.xlu0 %1350 }
 0x467   : > { %2355 = vmatprep.mubr.msk.f32.mxu0 %vm2859_vm3, %v2858_v7 }
 0x539   : > { %v1109_v29 = vpop.f32.mrb[8].mxu0 }
 0x53a   : > { %v1110_v30 = vadd.f32 %v2113_v28, %v1109_v29  ;;  %v2329_v31 = vpop.f32.mrb[9].mxu0 }
 0x53b   : > { %v1112_v32 = vpop.f32.mrb[10].mxu0  ;;  %v1266_v31 = vld [vmem:[%s589_s22] sm:$0x3] }
 0x53c   : > { %v1113_v33 = vadd.f32 %v2113_v28, %v1112_v32  ;;  %v2330_v34 = vpop.f32.mrb[11].mxu0  ;;  %v1116_v35 = vmax.f32 %v1110_v30, 0.0  ;;  %v2558_v28 = vld [vmem:[#allocation8 + $0x40] sm:$0xff]  }
 0x53d   : > { %v2559_v32 = vld [vmem:[#allocation8] sm:$0xff]  }
 0x53e   : > { %v1117_v36 = vmax.f32 %v1113_v33, 0.0 }
 0x540   : > { %v1118_v37 = vpack.c.bf16 %v1117_v36, %v1116_v35  ;;  %v2560_v35 = vld [vmem:[#allocation8 + $0x48] sm:$0xff]  }
 0x542   : > { %2348 = vmatmul.mubr.bf16.vlgmr.msra.gmra.mrb[4].mxu1 %v1118_v37 }
 0x543   : > { %2374 = vmatprep.mubr.msk.bf16.mxu1 %vm2859_vm3, %v2858_v7  ;;  %2359 = vmatpush3.bf16.msra.mxu1 %v2562_v39 }
 0x544   : > { %2360 = vmatprep.subr.bf16.mxu1 %v2858_v7 }
 0x547   : > { %2361 = vmatpush3.bf16.msra.mxu1 %v2565_v40 }
 0x548   : > { %2362 = vmatprep.subr.bf16.mxu1 %v2858_v7 }
 0x54b   : > { %2363 = vmatpush3.bf16.msra.mxu1 %v2568_v41  ;;  %v2563_v41 = vld [vmem:[#allocation8 + $0x50] sm:$0xff]  }
 0x54c   : > { %2364 = vmatprep.subr.bf16.mxu1 %v2858_v7 }
 0x54f   : > { %2365 = vmatpush3.bf16.msra.mxu1 %v2571_v42 }
 0x550   : > { %2366 = vmatprep.subr.bf16.mxu1 %v2858_v7 }
 0x553   : > { %2367 = vmatpush3.bf16.msra.mxu1 %v2574_v43 }
 0x554   : > { %2368 = vmatprep.subr.bf16.mxu1 %v2858_v7 }
 0x557   : > { %2369 = vmatpush3.bf16.msra.mxu1 %v2577_v44  ;;  %v2564_v44 = vld [vmem:[#allocation8 + $0x10] sm:$0xff]  }
 0x558   : > { %2370 = vmatprep.subr.bf16.mxu1 %v2858_v7 }
 0x615   : > { %v1222_v46 = vpop.f32.mrb[4].mxu1 }
 0x616   : > { %v2349_v47 = vpop.f32.mrb[5].mxu1  ;;  %v1223_v49 = vadd.f32 %v2122_v45, %v1222_v46 }
 0x617   : > { %v1225_v48 = vpop.f32.mrb[6].mxu1  ;;  %v2566_v47 = vld [vmem:[#allocation8 + $0x58] sm:$0xff]  }
 0x618   : > { %v1226_v50 = vadd.f32 %v2122_v45, %v1225_v48  ;;  %v2350_v51 = vpop.f32.mrb[7].mxu1 }
 0x61a   : > { %v1229_v52 = vadd.f32 %v1226_v50, %v1223_v49 }
 0x61c   : > { %v1230_v53 = vrot.slane %v1229_v52, 4 }
 0x61e   : > { %v1231_v54 = vadd.f32 %v1230_v53, %v1229_v52  ;;  %v2569_v52 = vld [vmem:[#allocation8 + $0x60] sm:$0xff]  }
 0x620   : > { %v1232_v55 = vrot.slane %v1231_v54, 2 }
 0x622   : > { %v1233_v57 = vadd.f32 %v1232_v55, %v1231_v54  ;;  %v2570_v54 = vld [vmem:[#allocation8 + $0x20] sm:$0xff]   ;;  %v2572_v55 = vld [vmem:[#allocation8 + $0x68] sm:$0xff]  }
 0x624   : > { %v1234_v58 = vrot.slane %v1233_v57, 1 }
 0x626   : > { %v1235_v59 = vadd.f32 %v1234_v58, %v1233_v57  ;;  %v2573_v57 = vld [vmem:[#allocation8 + $0x28] sm:$0xff]   ;;  %v2575_v58 = vld [vmem:[#allocation8 + $0x70] sm:$0xff]  }
 0x628   : > { %v1236_v60 = vmul.f32 0.0625, %v1235_v59  ;;  %v2576_v59 = vld [vmem:[#allocation8 + $0x30] sm:$0xff]  }
 0x62a   : > { %v1237_v61 = vsub.f32 %v1223_v49, %v1236_v60  ;;  %v1238_v62 = vsub.f32 %v1226_v50, %v1236_v60  ;;  %v2567_v50 = vld [vmem:[#allocation8 + $0x18] sm:$0xff]  }
 0x62b   : > { %v2578_v60 = vld [vmem:[#allocation8 + $0x78] sm:$0xff]  }
 0x62c   : > { %v1239_v63 = vmul.f32 %v1237_v61, %v1237_v61  ;;  %v1240_v0 = vmul.f32 %v1238_v62, %v1238_v62 }
 0x62e   : > { %v1241_v1 = vadd.f32 %v1240_v0, %v1239_v63  ;;  %v2581_v63 = vld [vmem:[#allocation8 + $0xb8] sm:$0xff]   ;;  %v1381_v0 = vld [vmem:[%s597_s28] sm:$0x3]  ;;  %s1891_s28 = scalar_lea.sflag [#allocation4], %s573_s7 }
 0x630   : > { %v1242_v2 = vrot.slane %v1241_v1, 4 }
 0x632   : > { %v1243_v3 = vadd.f32 %v1242_v2, %v1241_v1  ;;  %v1389_v1 = vpack.c.bf16 %v1381_v0, %v1381_v0 }
 0x634   : > { %v1244_v5 = vrot.slane %v1243_v3, 2 }
 0x636   : > { %v1245_v6 = vadd.f32 %v1244_v5, %v1243_v3  ;;  %v2582_v3 = vld [vmem:[#allocation10] sm:$0xff]  }
 0x638   : > { %v1246_v8 = vrot.slane %v1245_v6, 1 }
 0x63a   : > { %v1247_v9 = vadd.f32 %v1246_v8, %v1245_v6  ;;  %v2583_v8 = vld [vmem:[#allocation10 + $0x8] sm:$0xff]  }
 0x63c   : > { %v1248_v10 = vmul.f32 0.0625, %v1247_v9  ;;  %v2584_v9 = vld [vmem:[#allocation10 + $0x10] sm:$0xff]  }
 0x63e   : > { %v1250_v4 = vadd.f32 1e-05, %v1248_v10  ;;  %v2585_v10 = vld [vmem:[#allocation10 + $0x18] sm:$0xff]  }
 0x640   : > { %2600 = vrsqrt.f32 %v1250_v4  ;;  %v2586_v4 = vld [vmem:[#allocation10 + $0x20] sm:$0xff]  }
 0x64a   : > { %v2601_v12 = vpop.eup %2600 }
 0x64b   : > { %v1252_v15 = vmul.f32 %v2601_v12, %v1249_v11  ;;  %v2587_v11 = vld [vmem:[#allocation10 + $0x28] sm:$0xff]  }
 0x64d   : > { %v1256_v16 = vrot.slane %v1252_v15, %v3205_v56 }
 0x64f   : > { %v1258_v18 = vmul.f32 %v1256_v16, %v1238_v62  ;;  %v1257_v19 = vmul.f32 %v1256_v16, %v1237_v61  ;;  %v2580_v61 = vld [vmem:[#allocation8 + $0xb0] sm:$0xff]   ;;  %v2579_v62 = vld [vmem:[#allocation8 + $0x38] sm:$0xff]  }
 0x650   : > { %2371 = vmatpush3.bf16.msra.mxu1 %v2580_v61 }
 0x651   : > { %v1264_v22 = vadd.f32 %v2131_v17, %v1257_v19  ;;  %v1265_v23 = vadd.f32 %v2131_v17, %v1258_v18  ;;  %2372 = vmatprep.subr.bf16.mxu1 %v2858_v7  ;;  %v2589_v17 = vld [vmem:[#allocation10 + $0x38] sm:$0xff]   ;;  %v2590_v18 = vld [vmem:[#allocation11] sm:$0xff]   ;;  %v2591_v19 = vld [vmem:[#allocation11 + $0x8] sm:$0xff]  }
 0x653   : > { %v1365_v24 = vadd.f32 %v1358_v13, %v1264_v22  ;;  %v1363_v25 = vadd.f32 %v1347_v14, %v1264_v22  ;;  %v1366_v26 = vadd.f32 %v1362_v20, %v1265_v23  ;;  %v1364_v27 = vadd.f32 %v1351_v21, %v1265_v23  ;;  %v2588_v13 = vld [vmem:[#allocation10 + $0x30] sm:$0xff]   ;;  %v2593_v21 = vld [vmem:[#allocation11 + $0x18] sm:$0xff]  }
 0x654   : > { %v2427_v56 = vpack.c.bf16 %v1265_v23, %v1264_v22  ;;  %2373 = vmatpush3.bf16.msra.mxu1 %v2581_v63  ;;  %v2592_v20 = vld [vmem:[#allocation11 + $0x10] sm:$0xff]   ;;  %v2594_v22 = vld [vmem:[#allocation11 + $0x20] sm:$0xff]   ;;  %v2595_v23 = vld [vmem:[#allocation11 + $0x28] sm:$0xff]  }
 0x655   : > { %v1374_v29 = vmax.f32 %v1365_v24, %v1366_v26  ;;  %v1367_v30 = vmax.f32 %v1363_v25, %v1364_v27  ;;  %2398 = vmatprep.subr.bf16.mxu1 %v2858_v7  ;;  %v2133_v26 = vld [vmem:[%s3361_s12 + $0x8] ss:$0 sm:$0xff] }
 0x656   : > { %2428 = vmatpush3.bf16.msra.mxu0 %v2427_v56 }
 0x657   : > { %v1375_v33 = vrot.slane %v1374_v29, 4  ;;  %v1368_v34 = vrot.slane %v1367_v30, 4  ;;  %2223 = vmatprep.subr.bf16.mxu0 %v2558_v28  ;;  %2375 = vmatmul.mubr.bf16.vlgmr.msra.gmra.mrb[8].mxu1 %v1389_v1 }
 0x658   : > { %2414 = vmatprep.mubr.msk.bf16.mxu1 %vm2859_vm3, %v2858_v7  ;;  %2399 = vmatpush3.bf16.msra.mxu1 %v2590_v18 }
 0x659   : > { %v1376_v36 = vmax.f32 %v1374_v29, %v1375_v33  ;;  %v1369_v37 = vmax.f32 %v1367_v30, %v1368_v34  ;;  %2356 = vmatmul.mubr.msk.f32.vlgmr.msra.gmra.mrb[6].mxu0 %vm603_vm0, %v1266_v31  ;;  %2400 = vmatprep.subr.bf16.mxu1 %v2858_v7  ;;  %v2596_v33 = vld [vmem:[#allocation11 + $0x30] sm:$0xff]   ;;  %v2597_v34 = vld [vmem:[#allocation11 + $0x38] sm:$0xff]  }
 0x65a   : > { %2224 = vmatpush3.bf16.msra.mxu0 %v2559_v32 }
 0x65b   : > { %v1377_v39 = vrot.slane %v1376_v36, 2  ;;  %v1370_v40 = vrot.slane %v1369_v37, 2  ;;  %2225 = vmatprep.subr.bf16.mxu0 %v2560_v35  ;;  %v2158_v35 = vld [vmem:[%s3361_s12 + $0x9] ss:$0 sm:$0xff] }
 0x65c   : > { %2401 = vmatpush3.bf16.msra.mxu1 %v2591_v19 }
 0x65d   : > { %v1378_v42 = vmax.f32 %v1376_v36, %v1377_v39  ;;  %v1371_v43 = vmax.f32 %v1369_v37, %v1370_v40  ;;  %2402 = vmatprep.subr.bf16.mxu1 %v2858_v7 }
 0x65e   : > { %2226 = vmatpush3.bf16.msra.mxu0 %v2561_v38 }
 0x65f   : > { %v1379_v45 = vrot.slane %v1378_v42, 1  ;;  %v1372_v46 = vrot.slane %v1371_v43, 1  ;;  %2227 = vmatprep.subr.bf16.mxu0 %v2563_v41 }
 0x660   : > { %2403 = vmatpush3.bf16.msra.mxu1 %v2592_v20 }
 0x661   : > { %v1380_v48 = vmax.f32 %v1378_v42, %v1379_v45  ;;  %v1373_v49 = vmax.f32 %v1371_v43, %v1372_v46  ;;  %2404 = vmatprep.subr.bf16.mxu1 %v2858_v7 }
 0x662   : > { %2228 = vmatpush3.bf16.msra.mxu0 %v2564_v44 }
 0x663   : > { %v1385_v51 = vsel %vm1384_vm4, %v1380_v48, %v1373_v49  ;;  %2229 = vmatprep.subr.bf16.mxu0 %v2566_v47 }
 0x664   : > { %v1388_v53 = vpack.c.bf16 %v1385_v51, %v1385_v51  ;;  %2405 = vmatpush3.bf16.msra.mxu1 %v2593_v21 }
 0x665   : > { %2406 = vmatprep.subr.bf16.mxu1 %v2858_v7 }
 0x666   : > { %1619 = vmatprep.mubr.bf16.mxu0 %v1388_v53  ;;  %2230 = vmatpush3.bf16.msra.mxu0 %v2567_v50 }
 0x667   : > { %2231 = vmatprep.subr.bf16.mxu0 %v2569_v52 }
 0x668   : > { %2407 = vmatpush3.bf16.msra.mxu1 %v2594_v22 }
 0x669   : > { %2408 = vmatprep.subr.bf16.mxu1 %v2858_v7 }
 0x66a   : > { %2232 = vmatpush3.bf16.msra.mxu0 %v2570_v54 }
 0x66b   : > { %2233 = vmatprep.subr.bf16.mxu0 %v2572_v55 }
 0x66c   : > { %2409 = vmatpush3.bf16.msra.mxu1 %v2595_v23 }
 0x66d   : > { %2410 = vmatprep.subr.bf16.mxu1 %v2858_v7 }
 0x66e   : > { %2234 = vmatpush3.bf16.msra.mxu0 %v2573_v57 }
 0x66f   : > { %2235 = vmatprep.subr.bf16.mxu0 %v2575_v58 }
 0x670   : > { %2411 = vmatpush3.bf16.msra.mxu1 %v2596_v33 }
 0x671   : > { %2412 = vmatprep.subr.bf16.mxu1 %v2858_v7 }
 0x672   : > { %2236 = vmatpush3.bf16.msra.mxu0 %v2576_v59 }
 0x673   : > { %2237 = vmatprep.subr.bf16.mxu0 %v2578_v60 }
 0x674   : > { %2413 = vmatpush3.bf16.msra.mxu1 %v2597_v34 }
 0x676   : > { %2238 = vmatpush3.bf16.msra.mxu0 %v2579_v62 }
 0x677   : > { %2378 = vmatprep.subr.bf16.mxu0 %v2858_v7 }
 0x72a   : > { %v1661_v12 = vpop.f32.mrb[8].mxu1 }
 0x72b   : > { %v2376_v14 = vpop.f32.mrb[9].mxu1 }
 0x72c   : > { %v1336_v2 = vpop.f32.mrb[6].mxu0  ;;  %v1664_v15 = vpop.f32.mrb[10].mxu1 }
 0x72d   : > { %v1387_v5 = vpack.c.bf16 %v1336_v2, %v1336_v2  ;;  %v2357_v6 = vpop.f32.mrb[7].mxu0  ;;  %v2377_v16 = vpop.f32.mrb[11].mxu1 }
 0x72f   : > { %1620 = vmatmul.mubr.bf16.vlgmr.msra.gmra.mrb[12].mxu0 %v1387_v5 }
 0x730   : > { %2379 = vmatpush3.bf16.msra.mxu0 %v2582_v3  ;;  %2394 = vmatprep.mubr.msk.bf16.mxu0 %vm2859_vm3, %v2858_v7 }
 0x731   : > { %2380 = vmatprep.subr.bf16.mxu0 %v2858_v7 }
 0x734   : > { %2381 = vmatpush3.bf16.msra.mxu0 %v2583_v8 }
 0x735   : > { %2382 = vmatprep.subr.bf16.mxu0 %v2858_v7 }
 0x738   : > { %2383 = vmatpush3.bf16.msra.mxu0 %v2584_v9 }
 0x739   : > { %2384 = vmatprep.subr.bf16.mxu0 %v2858_v7 }
 0x73c   : > { %2385 = vmatpush3.bf16.msra.mxu0 %v2585_v10 }
 0x73d   : > { %2386 = vmatprep.subr.bf16.mxu0 %v2858_v7 }
 0x740   : > { %2387 = vmatpush3.bf16.msra.mxu0 %v2586_v4 }
 0x741   : > { %2388 = vmatprep.subr.bf16.mxu0 %v2858_v7 }
 0x744   : > { %2389 = vmatpush3.bf16.msra.mxu0 %v2587_v11 }
 0x745   : > { %2390 = vmatprep.subr.bf16.mxu0 %v2858_v7 }
 0x748   : > { %2391 = vmatpush3.bf16.msra.mxu0 %v2588_v13 }
 0x749   : > { %2392 = vmatprep.subr.bf16.mxu0 %v2858_v7  ;;  %v2167_v7 = vld [vmem:[%s3361_s12 + $0xa] ss:$0 sm:$0xff] }
 0x74c   : > { %2393 = vmatpush3.bf16.msra.mxu0 %v2589_v17 }
 0x802   : > { %v2239_v24 = vpop.f32.mrb[12].mxu0 }
 0x803   : > { %v2240_v25 = vpop.f32.mrb[13].mxu0 }
 0x804   : > { %v2241_v27 = vadd.f32 %v2240_v25, %v2239_v24  ;;  %v2242_v28 = vpop.f32.mrb[14].mxu0 }
 0x805   : > { %v2243_v56 = vpop.f32.mrb[15].mxu0 }
 0x806   : > { %v1622_v29 = vadd.f32 %v2241_v27, %v2133_v26 }
 0x808   : > { %v1662_v30 = vadd.f32 %v1661_v12, %v1622_v29 }
 0x80a   : > { %v1667_v31 = vmax.f32 %v1662_v30, 0.0 }
 0x80c   : > { %v1668_v32 = vpack.c.bf16 %v1667_v31, %v1667_v31 }
 0x80e   : > { %2395 = vmatmul.mubr.bf16.vlgmr.msra.gmra.mrb[16].mxu0 %v1668_v32 }
 0x8e1   : > { %v1772_v36 = vpop.f32.mrb[16].mxu0 }
 0x8e2   : > { %v1773_v37 = vadd.f32 %v2158_v35, %v1772_v36  ;;  %v2396_v38 = vpop.f32.mrb[17].mxu0 }
 0x8e3   : > { %v1775_v39 = vpop.f32.mrb[18].mxu0 }
 0x8e4   : > { %v1778_v40 = vmax.f32 %v1773_v37, 0.0  ;;  %v2397_v41 = vpop.f32.mrb[19].mxu0 }
 0x8e6   : > { %v1779_v42 = vpack.c.bf16 %v1778_v40, %v1778_v40 }
 0x8e8   : > { %2415 = vmatmul.mubr.bf16.vlgmr.msra.gmra.mrb[12].mxu1 %v1779_v42 }
 0x9bb   : > { %v1883_v43 = vpop.f32.mrb[12].mxu1 }
 0x9bc   : > { %v1884_v44 = vadd.f32 %v2167_v7, %v1883_v43  ;;  %v2416_v45 = vpop.f32.mrb[13].mxu1 }
 0x9bd   : > { %v1886_v46 = vpop.f32.mrb[14].mxu1 }
 0x9be   : > { %1889 = vst [vmem:[%s575_s24] sm:$0x3] %v1884_v44  ;;  %v2417_v47 = vpop.f32.mrb[15].mxu1 }
 0x9bf   : > { %2783 = shalt.err (!%p2780_p2)
}
 0x9c0   : > { %s2784_s14 = scalar_lea.hbm %s3307_s30, 32  ;;  %s2788_s25 = scalar_lea.hbm %s3403_s19, 128 }
 0x9c1   : > { %p2785_p3 = scmp.ne.s32.totalorder %s3307_s30, %s2784_s14  ;;  %p2789_p7 = scmp.lt.u32.totalorder %s3307_s30, %s3403_s19 }
 0x9c2   : > { %p2790_p8 = scmp.lt.u32.totalorder %s2788_s25, %s2784_s14  ;;  %p2792_p13 = scmp.lt.u32.totalorder %s2784_s14, %s3307_s30 }
 0x9c3   : > { %p2786_p4 = pnand %p2785_p3, %p3404_p1 }
 0x9c4   : > { %p2791_p11 = por %p2790_p8, %p2789_p7 }
 0x9c5   : > { %p2787_p12 = pneg %p2786_p4 }
 0x9c6   : > { %p2793_p6 = por %p2792_p13, %p2791_p11 }
 0x9c8   : > { %p2794_p9 = pnand %p2793_p6, %p2787_p12 }
 0x9ca   : > { %2797 = shalt.err (!%p2794_p9)
}
 0x9cb   : > { %2453 = dma.vmem_to_hbm [thread:$0]  (%p3404_p1), %s3309_s15, 32, %s3307_s30, %s1891_s28  }
 0x9cc PF: > { %s3405_s21 = sld [smem:[#allocation22_spill]]  ;;  %s3406_s24 = sld [smem:[#allocation19_spill]] }
 0x9cd   : > { %s3407_s27 = sld [smem:[#allocation26_spill]] }
 0x9d2   : > { %p2490_p5 = scmp.ge.s32.totalorder %s3405_s21, 2  ;;  %s1916_s22 = sand.u32 1, %s3406_s24  }
 0x9d3   : > { %p3408_p0 = scmp.ne.s32.totalorder %s3407_s27, 0  ;;  %s1917_s29 = scalar_lea.sflag [#allocation4], %s1916_s22 }
 0x9d5   : > { %p2475_p10 = pnand %p2490_p5, %p3408_p0 }
 0x9d7   : > { %2831 = dma.done.wait (!%p2475_p10), %s1917_s29, 32  }
 0x9d8   : > { %2833 = vsyncadd (!%p2475_p10), %s1917_s29, 4294967264  ;;  %s3409_s28 = sld [smem:[#allocation23_spill]]  ;;  %s3410_s25 = sld [smem:[#allocation20_spill]] }
 0x9d9   : > { %s3411_s26 = sld [smem:[#allocation21_spill]]  ;;  %s3412_s27 = sld [smem:[#allocation24_spill]] }
 0x9de   : > { %p27_p2 = scmp.ge.s32.totalorder %s3409_s28, 6  }
 0x9e0   :  { %29 = sbr.rel (!%p27_p2) target bundleno = 10 (0xa), region = 144 }
 0x9e7   :  { %1922 = vsyncpa [#allocation3], 1 }
 0x9e8   :  { %1924 = vsyncpa [#allocation3 + $0x1], 1 }
 0x9e9   :  { %1925 = vsyncpa [#allocation6], 1 }
 0x9ea   :  { %1926 = vsyncpa [#allocation9], 1 }
 0x9eb   :  { %1927 = vsyncpa [#allocation12], 1 }
 0x9ec   :  { %1928 = vsyncpa [#allocation4], 1 }
 0x9ed   :  { %1930 = vsyncpa [#allocation4 + $0x1], 1 }

</bundles_post_ra>
